<compile_context>
chip_gen: v7x
topology: tpu7x:2x2x1
jax: 0.10.0
libtpu: 0.0.40
codegen_flags: <defaults>
</compile_context>

<pallas_src>
import functools
import math

import jax
import jax.numpy as jnp
from jax.experimental import pallas as pl
from jax.experimental.pallas import tpu as pltpu


def _layer_norm(y, gamma, beta, eps):
    # Two-pass (centered) variance: robust when |mean| >> std (review correctness note).
    mu = jnp.mean(y, axis=-1, keepdims=True)
    d = y - mu
    var = jnp.mean(d * d, axis=-1, keepdims=True)
    return d * jax.lax.rsqrt(var + eps) * gamma + beta


def _encoder_layer_kernel(
    src_ref, pos_ref,
    wqk_ref, bqk_ref, wv_ref, bv_ref,
    wo_ref, bo_ref,
    w1_ref, b1_ref, w2_ref, b2_ref,
    g1_ref, beta1_ref, g2_ref, beta2_ref,
    out_ref,
    *, nhead: int, head_dim: int, eps: float = 1e-5,
):
    f32 = jnp.float32
    cdt = wqk_ref.dtype                      # bf16 compute dtype for MXU operands

    Bt, S, D = src_ref.shape
    R = Bt * S
    H, hd = nhead, head_dim

    # Flatten (Bt, S, D) -> (Bt*S, D): merging leading dims is layout-free and gives the
    # projection / FFN matmuls a taller M dimension (better MXU fill at small S).
    x32 = src_ref[...].reshape(R, D).astype(f32)      # residual / LayerNorm path (f32)
    x_bf = x32.astype(cdt)                            # single bf16 cast, reused below
    p_bf = pos_ref[...].reshape(R, D).astype(cdt)

    # ---- fused q/k projection (softmax scale folded into wq/bq) + v projection ----
    qk_in = x_bf + p_bf                               # q = k = with_pos_embed(src, pos)
    qk = jnp.dot(qk_in, wqk_ref[...], preferred_element_type=f32) + bqk_ref[...]   # (R, 2D)
    v = jnp.dot(x_bf, wv_ref[...], preferred_element_type=f32) + bv_ref[...]       # (R, D)

    q_bf = qk[:, :D].astype(cdt)
    k_bf = qk[:, D:].astype(cdt)
    v_bf = v.astype(cdt)

    # ---- multi-head attention: static per-(batch, head) slices, no reshape/swapaxes ----
    # Output projection is accumulated per head, so there is no head concatenate and only
    # one (S, S) score tile is live at a time.
    src2_rows = []
    for b in range(Bt):
        r0 = b * S
        acc = jnp.zeros((S, D), f32)
        for h in range(H):
            c0 = h * hd
            qh = q_bf[r0:r0 + S, c0:c0 + hd]          # (S, hd)
            kh = k_bf[r0:r0 + S, c0:c0 + hd]
            vh = v_bf[r0:r0 + S, c0:c0 + hd]
            s = jnp.einsum("qd,kd->qk", qh, kh, preferred_element_type=f32)   # (S, S)
            s = s - jnp.max(s, axis=-1, keepdims=True)
            e = jnp.exp(s)
            p_attn = e * pl.reciprocal(jnp.sum(e, axis=-1, keepdims=True), approx=True)
            oh = jnp.dot(p_attn.astype(cdt), vh, preferred_element_type=f32)  # (S, hd)
            acc = acc + jnp.dot(oh.astype(cdt), wo_ref[c0:c0 + hd, :],
                                preferred_element_type=f32)
        src2_rows.append(acc)
    src2 = jnp.concatenate(src2_rows, axis=0) + bo_ref[...]                   # (R, D)

    # ---- residual + LayerNorm1 ----
    y = _layer_norm(x32 + src2, g1_ref[...], beta1_ref[...], eps)

    # ---- feed-forward (relu) + residual + LayerNorm2 ----
    # TODO(synk): for very large S / dim_ff, tile the q axis with an online-softmax (flash)
    # loop over kv tiles and tile dim_ff with an accumulator to bound peak VMEM on v7x.
    h1 = jnp.dot(y.astype(cdt), w1_ref[...], preferred_element_type=f32) + b1_ref[...]
    h1 = jnp.maximum(h1, 0.0)
    ff = jnp.dot(h1.astype(cdt), w2_ref[...], preferred_element_type=f32) + b2_ref[...]
    z = _layer_norm(y + ff, g2_ref[...], beta2_ref[...], eps)

    out_ref[...] = z.reshape(Bt, S, D).astype(out_ref.dtype)


def _pick_batch_block(batch, seq, target_rows=256):
    """Largest divisor of `batch` whose row count Bt*seq stays near `target_rows`."""
    bt = max(1, min(batch, max(1, target_rows // max(seq, 1))))
    while batch % bt:
        bt -= 1
    return bt


def _vmem_capacity_bytes(default=128 * 2**20):
    try:
        info = pltpu.get_tpu_info()
    except Exception:
        return default
    for attr in ("vmem_capacity_bytes", "vmem_bytes", "vmem_size_bytes"):
        val = getattr(info, attr, None)
        if val:
            return int(val)
    return default


def transformer_encoder_layer(src, pos, params, *, nhead, compute_dtype=jnp.bfloat16):
    """src, pos: (B, S, D).  params: dict of PyTorch-layout weights (see init_params)."""
    B, S, D = src.shape
    head_dim = D // nhead
    dim_ff = params["w1"].shape[0]
    scale = 1.0 / math.sqrt(head_dim)

    # --- wrapper-side layout plumbing: pre-transpose, fuse q/k, fold softmax scale, cast bf16 ---
    wqk = jnp.concatenate([(params["wq"] * scale).T, params["wk"].T], axis=1).astype(compute_dtype)
    bqk = jnp.concatenate([params["bq"] * scale, params["bk"]], axis=-1).astype(jnp.float32)
    wv = params["wv"].T.astype(compute_dtype)
    wo = params["wo"].T.astype(compute_dtype)
    w1 = params["w1"].T.astype(compute_dtype)     # (D, dim_ff)
    w2 = params["w2"].T.astype(compute_dtype)     # (dim_ff, D)
    bv = params["bv"].astype(jnp.float32)
    bo = params["bo"].astype(jnp.float32)
    b1 = params["b1"].astype(jnp.float32)
    b2 = params["b2"].astype(jnp.float32)
    g1 = params["g1"].astype(jnp.float32)
    be1 = params["beta1"].astype(jnp.float32)
    g2 = params["g2"].astype(jnp.float32)
    be2 = params["beta2"].astype(jnp.float32)
    # TODO(synk): int8 weights (+f32 scales) would double MXU throughput on v5e/v6e; v7x has
    # no int MXU, so a quantized path there must use fp8 instead.

    weights = (wqk, bqk, wv, bv, wo, bo, w1, b1, w2, b2, g1, be1, g2, be2)

    # Weight index_maps are constant over the grid -> single-buffer them; the default second
    # pipeline buffer would only double weight VMEM for no overlap benefit.
    def weight_spec(shape):
        nd = len(shape)
        return pl.BlockSpec(shape, lambda b: (0,) * nd, pipeline_mode=pl.Buffered(1))

    # Block several batch elements per grid step so the projection/FFN matmuls see Bt*S rows
    # (much better MXU fill than S rows against a 128/256-wide systolic array).
    Bt = _pick_batch_block(B, S)
    grid = (B // Bt,)
    io_spec = pl.BlockSpec((Bt, S, D), lambda b: (b, 0, 0))
    # TODO(synk): on v7x (2 TensorCores) add a second parallel axis over sequence tiles when
    # B // Bt == 1 so both cores get work.

    kernel = functools.partial(_encoder_layer_kernel, nhead=nhead, head_dim=head_dim)

    # Generation-aware VMEM budget: single-buffered weights + double-buffered I/O blocks +
    # f32 activation slabs, with headroom, capped at ~85% of this chip's per-core VMEM.
    weight_bytes = sum(int(w.size) * w.dtype.itemsize for w in weights)
    io_bytes = 2 * 3 * Bt * S * D * 4                       # src/pos/out blocks, double-buffered
    act_bytes = 4 * (Bt * S * (6 * D + 2 * dim_ff) + 2 * S * S)
    needed = int(1.5 * (weight_bytes + io_bytes + act_bytes)) + (4 << 20)
    vmem_limit = int(min(0.85 * _vmem_capacity_bytes(), max(16 << 20, needed)))

    flops = B * (
        2 * S * D * 2 * D                     # fused q/k projection
        + 2 * S * D * D                       # v projection
        + 2 * 2 * nhead * S * S * head_dim    # scores + attn @ v
        + 2 * S * D * D                       # output projection
        + 2 * 2 * S * D * dim_ff              # feed-forward
    )
    cost = pl.CostEstimate(
        flops=int(flops),
        transcendentals=int(B * nhead * S * S),
        bytes_accessed=int(3 * B * S * D * 4 + weight_bytes),
    )

    return pl.pallas_call(
        kernel,
        out_shape=jax.ShapeDtypeStruct((B, S, D), src.dtype),
        grid_spec=pltpu.PrefetchScalarGridSpec(
            num_scalar_prefetch=0,
            grid=grid,
            in_specs=[io_spec, io_spec] + [weight_spec(w.shape) for w in weights],
            out_specs=io_spec,
        ),
        compiler_params=pltpu.CompilerParams(
            dimension_semantics=("parallel",),
            vmem_limit_bytes=vmem_limit,
        ),
        cost_estimate=cost,
    )(src, pos, *weights)


def init_params(key, d_model, nhead, dim_ff):
    ks = jax.random.split(key, 8)
    s = 0.1
    # nn.MultiheadAttention in_proj_weight split into q/k/v pieces (PyTorch layout: out x in).
    wq = jax.random.normal(ks[0], (d_model, d_model), jnp.float32) * s
    wk = jax.random.normal(ks[1], (d_model, d_model), jnp.float32) * s
    wv = jax.random.normal(ks[2], (d_model, d_model), jnp.float32) * s
    wo = jax.random.normal(ks[3], (d_model, d_model), jnp.float32) * s
    w1 = jax.random.normal(ks[4], (dim_ff, d_model), jnp.float32) * s
    w2 = jax.random.normal(ks[5], (d_model, dim_ff), jnp.float32) * s
    bq = jax.random.normal(ks[6], (1, d_model), jnp.float32) * s
    bk = jnp.zeros((1, d_model), jnp.float32)
    bv = jax.random.normal(ks[7], (1, d_model), jnp.float32) * s
    return dict(
        wq=wq, wk=wk, wv=wv,
        bq=bq, bk=bk, bv=bv,
        wo=wo, bo=jnp.zeros((1, d_model), jnp.float32),
        w1=w1, b1=jnp.zeros((1, dim_ff), jnp.float32),
        w2=w2, b2=jnp.zeros((1, d_model), jnp.float32),
        g1=jnp.ones((1, d_model), jnp.float32), beta1=jnp.zeros((1, d_model), jnp.float32),
        g2=jnp.ones((1, d_model), jnp.float32), beta2=jnp.zeros((1, d_model), jnp.float32),
    )


def reference_forward(src, pos, params, *, nhead):
    """Pure-JAX f32 reference of forward_post with dropout=identity."""
    B, S, D = src.shape
    hd = D // nhead
    qk = src + pos
    q = qk @ params["wq"].T + params["bq"]
    k = qk @ params["wk"].T + params["bk"]
    v = src @ params["wv"].T + params["bv"]

    def split(x):  # (B, S, D) -> (B, H, S, hd)
        return x.reshape(B, S, nhead, hd).transpose(0, 2, 1, 3)

    qh, kh, vh = split(q), split(k), split(v)
    scores = jnp.einsum("bhqd,bhkd->bhqk", qh, kh) / math.sqrt(hd)
    attn = jax.nn.softmax(scores, axis=-1)
    o = jnp.einsum("bhqk,bhkd->bhqd", attn, vh).transpose(0, 2, 1, 3).reshape(B, S, D)
    src2 = o @ params["wo"].T + params["bo"]
    x = src + src2

    def ln(x, g, b):
        mu = jnp.mean(x, -1, keepdims=True)
        var = jnp.mean((x - mu) ** 2, -1, keepdims=True)
        return (x - mu) * jax.lax.rsqrt(var + 1e-5) * g + b

    x = ln(x, params["g1"], params["beta1"])
    ff = jnp.maximum(x @ params["w1"].T + params["b1"], 0.0) @ params["w2"].T + params["b2"]
    x = ln(x + ff, params["g2"], params["beta2"])
    return x


if __name__ == "__main__":
    # TODO(synk): dropout layers are treated as identity (eval mode); training-time
    # stochastic dropout is not reproduced in-kernel.
    # Lane-dense small shapes: D is a multiple of 128, S a multiple of 8.
    B, S, D, NHEAD, DIM_FF = 2, 16, 128, 4, 256

    key = jax.random.PRNGKey(0)
    k_src, k_pos, k_par = jax.random.split(key, 3)
    src = jax.random.normal(k_src, (B, S, D), jnp.float32)
    pos = jax.random.normal(k_pos, (B, S, D), jnp.float32)
    params = init_params(k_par, D, NHEAD, DIM_FF)

    out = transformer_encoder_layer(src, pos, params, nhead=NHEAD)
    out = jax.block_until_ready(out)

    ref = reference_forward(src, pos, params, nhead=NHEAD)
    assert out.shape == (B, S, D)
    err = jnp.max(jnp.abs(out - ref))
    # bf16 matmul operands (f32 accumulation) -> slightly relaxed tolerance vs f32 reference.
    assert jnp.allclose(out, ref, atol=3e-2, rtol=3e-2), f"max err {err}"

    print("KERNEL_OK")
</pallas_src>

<mosaic_0001>
module attributes {stable_mosaic.version = 11 : i64} {
  func.func @_encoder_layer_kernel(%arg0: i32, %arg1: memref<2x16x128xf32, #tpu.memory_space<vmem>>, %arg2: memref<2x16x128xf32, #tpu.memory_space<vmem>>, %arg3: memref<128x256xbf16, #tpu.memory_space<vmem>>, %arg4: memref<1x256xf32, #tpu.memory_space<vmem>>, %arg5: memref<128x128xbf16, #tpu.memory_space<vmem>>, %arg6: memref<1x128xf32, #tpu.memory_space<vmem>>, %arg7: memref<128x128xbf16, #tpu.memory_space<vmem>>, %arg8: memref<1x128xf32, #tpu.memory_space<vmem>>, %arg9: memref<128x256xbf16, #tpu.memory_space<vmem>>, %arg10: memref<1x256xf32, #tpu.memory_space<vmem>>, %arg11: memref<256x128xbf16, #tpu.memory_space<vmem>>, %arg12: memref<1x128xf32, #tpu.memory_space<vmem>>, %arg13: memref<1x128xf32, #tpu.memory_space<vmem>>, %arg14: memref<1x128xf32, #tpu.memory_space<vmem>>, %arg15: memref<1x128xf32, #tpu.memory_space<vmem>>, %arg16: memref<1x128xf32, #tpu.memory_space<vmem>>, %arg17: memref<2x16x128xf32, #tpu.memory_space<vmem>>) attributes {dimension_semantics = [#tpu.dimension_semantics<parallel>], iteration_bounds = array<i64: 1>, scalar_prefetch = 0 : i64, scratch_operands = 0 : i64, tpu.core_type = #tpu.core_type<tc>, window_params = [{transform_indices = @transform_0, window_bounds = array<i64: 2, 16, 128>}, {transform_indices = @transform_1, window_bounds = array<i64: 2, 16, 128>}, {pipeline_mode = #tpu.pipeline_mode<synchronous>, transform_indices = @transform_2, window_bounds = array<i64: 128, 256>}, {pipeline_mode = #tpu.pipeline_mode<synchronous>, transform_indices = @transform_3, window_bounds = array<i64: 1, 256>}, {pipeline_mode = #tpu.pipeline_mode<synchronous>, transform_indices = @transform_4, window_bounds = array<i64: 128, 128>}, {pipeline_mode = #tpu.pipeline_mode<synchronous>, transform_indices = @transform_5, window_bounds = array<i64: 1, 128>}, {pipeline_mode = #tpu.pipeline_mode<synchronous>, transform_indices = @transform_6, window_bounds = array<i64: 128, 128>}, {pipeline_mode = #tpu.pipeline_mode<synchronous>, transform_indices = @transform_7, window_bounds = array<i64: 1, 128>}, {pipeline_mode = #tpu.pipeline_mode<synchronous>, transform_indices = @transform_8, window_bounds = array<i64: 128, 256>}, {pipeline_mode = #tpu.pipeline_mode<synchronous>, transform_indices = @transform_9, window_bounds = array<i64: 1, 256>}, {pipeline_mode = #tpu.pipeline_mode<synchronous>, transform_indices = @transform_10, window_bounds = array<i64: 256, 128>}, {pipeline_mode = #tpu.pipeline_mode<synchronous>, transform_indices = @transform_11, window_bounds = array<i64: 1, 128>}, {pipeline_mode = #tpu.pipeline_mode<synchronous>, transform_indices = @transform_12, window_bounds = array<i64: 1, 128>}, {pipeline_mode = #tpu.pipeline_mode<synchronous>, transform_indices = @transform_13, window_bounds = array<i64: 1, 128>}, {pipeline_mode = #tpu.pipeline_mode<synchronous>, transform_indices = @transform_14, window_bounds = array<i64: 1, 128>}, {pipeline_mode = #tpu.pipeline_mode<synchronous>, transform_indices = @transform_15, window_bounds = array<i64: 1, 128>}, {transform_indices = @transform_16, window_bounds = array<i64: 2, 16, 128>}]} {
    %c0 = arith.constant 0 : index
    %c0_0 = arith.constant 0 : index
    %c0_1 = arith.constant 0 : index
    %0 = vector.load %arg1[%c0, %c0_0, %c0_1] : memref<2x16x128xf32, #tpu.memory_space<vmem>>, vector<2x16x128xf32>
    %1 = vector.shape_cast %0 : vector<2x16x128xf32> to vector<32x128xf32>
    %2 = arith.truncf %1 : vector<32x128xf32> to vector<32x128xbf16>
    %c0_2 = arith.constant 0 : index
    %c0_3 = arith.constant 0 : index
    %c0_4 = arith.constant 0 : index
    %3 = vector.load %arg2[%c0_2, %c0_3, %c0_4] : memref<2x16x128xf32, #tpu.memory_space<vmem>>, vector<2x16x128xf32>
    %4 = vector.shape_cast %3 : vector<2x16x128xf32> to vector<32x128xf32>
    %5 = arith.truncf %4 : vector<32x128xf32> to vector<32x128xbf16>
    %6 = arith.addf %2, %5 : vector<32x128xbf16>
    %c0_5 = arith.constant 0 : index
    %c0_6 = arith.constant 0 : index
    %7 = vector.load %arg3[%c0_5, %c0_6] : memref<128x256xbf16, #tpu.memory_space<vmem>>, vector<128x256xbf16>
    %cst = arith.constant dense<0.000000e+00> : vector<32x256xf32>
    %8 = tpu.matmul %6, %7, %cst {dimension_numbers = #tpu.dot_dimension_numbers<[1], [0], [0], [1], [0, 0, 1, 1], [], []>} : vector<32x128xbf16>, vector<128x256xbf16>, vector<32x256xf32> -> vector<32x256xf32>
    %c0_7 = arith.constant 0 : index
    %c0_8 = arith.constant 0 : index
    %9 = vector.load %arg4[%c0_7, %c0_8] : memref<1x256xf32, #tpu.memory_space<vmem>>, vector<1x256xf32>
    %10 = vector.broadcast %9 : vector<1x256xf32> to vector<32x256xf32>
    %11 = arith.addf %8, %10 : vector<32x256xf32>
    %c0_9 = arith.constant 0 : index
    %c0_10 = arith.constant 0 : index
    %12 = vector.load %arg5[%c0_9, %c0_10] : memref<128x128xbf16, #tpu.memory_space<vmem>>, vector<128x128xbf16>
    %cst_11 = arith.constant dense<0.000000e+00> : vector<32x128xf32>
    %13 = tpu.matmul %2, %12, %cst_11 {dimension_numbers = #tpu.dot_dimension_numbers<[1], [0], [0], [1], [0, 0, 1, 1], [], []>} : vector<32x128xbf16>, vector<128x128xbf16>, vector<32x128xf32> -> vector<32x128xf32>
    %c0_12 = arith.constant 0 : index
    %c0_13 = arith.constant 0 : index
    %14 = vector.load %arg6[%c0_12, %c0_13] : memref<1x128xf32, #tpu.memory_space<vmem>>, vector<1x128xf32>
    %15 = vector.broadcast %14 : vector<1x128xf32> to vector<32x128xf32>
    %16 = arith.addf %13, %15 : vector<32x128xf32>
    %17 = vector.extract_strided_slice %11 {offsets = [0, 0], sizes = [32, 128], strides = [1, 1]} : vector<32x256xf32> to vector<32x128xf32>
    %18 = arith.truncf %17 : vector<32x128xf32> to vector<32x128xbf16>
    %19 = vector.extract_strided_slice %11 {offsets = [0, 128], sizes = [32, 128], strides = [1, 1]} : vector<32x256xf32> to vector<32x128xf32>
    %20 = arith.truncf %19 : vector<32x128xf32> to vector<32x128xbf16>
    %21 = arith.truncf %16 : vector<32x128xf32> to vector<32x128xbf16>
    %cst_14 = arith.constant 0.000000e+00 : f32
    %22 = vector.broadcast %cst_14 : f32 to vector<16x128xf32>
    %23 = vector.extract_strided_slice %18 {offsets = [0, 0], sizes = [16, 32], strides = [1, 1]} : vector<32x128xbf16> to vector<16x32xbf16>
    %24 = vector.extract_strided_slice %20 {offsets = [0, 0], sizes = [16, 32], strides = [1, 1]} : vector<32x128xbf16> to vector<16x32xbf16>
    %25 = vector.extract_strided_slice %21 {offsets = [0, 0], sizes = [16, 32], strides = [1, 1]} : vector<32x128xbf16> to vector<16x32xbf16>
    "tpu.trace_start"() <{level = 10 : i32, message = "qd,kd->qk"}> : () -> ()
    %cst_15 = arith.constant dense<0.000000e+00> : vector<16x16xf32>
    %26 = tpu.matmul %23, %24, %cst_15 {dimension_numbers = #tpu.dot_dimension_numbers<[1], [1], [0], [0], [0, 0, 1, 0], [], []>} : vector<16x32xbf16>, vector<16x32xbf16>, vector<16x16xf32> -> vector<16x16xf32>
    "tpu.trace_stop"() : () -> ()
    %cst_16 = arith.constant dense<0xFF800000> : vector<16xf32>
    %27 = vector.multi_reduction <maximumf>, %26, %cst_16 [1] : vector<16x16xf32> to vector<16xf32>
    %28 = vector.shape_cast %27 : vector<16xf32> to vector<16x1xf32>
    %29 = vector.broadcast %28 : vector<16x1xf32> to vector<16x16xf32>
    %30 = arith.subf %26, %29 : vector<16x16xf32>
    %31 = math.exp %30 : vector<16x16xf32>
    %cst_17 = arith.constant dense<0.000000e+00> : vector<16xf32>
    %32 = vector.multi_reduction <add>, %31, %cst_17 [1] : vector<16x16xf32> to vector<16xf32>
    %33 = vector.shape_cast %32 : vector<16xf32> to vector<16x1xf32>
    %34 = tpu.reciprocal %33 {approx = true} : vector<16x1xf32> -> vector<16x1xf32>
    %35 = vector.broadcast %34 : vector<16x1xf32> to vector<16x16xf32>
    %36 = arith.mulf %31, %35 : vector<16x16xf32>
    %37 = arith.truncf %36 : vector<16x16xf32> to vector<16x16xbf16>
    %cst_18 = arith.constant dense<0.000000e+00> : vector<16x32xf32>
    %38 = tpu.matmul %37, %25, %cst_18 {dimension_numbers = #tpu.dot_dimension_numbers<[1], [0], [0], [1], [0, 0, 1, 1], [], []>} : vector<16x16xbf16>, vector<16x32xbf16>, vector<16x32xf32> -> vector<16x32xf32>
    %39 = arith.truncf %38 : vector<16x32xf32> to vector<16x32xbf16>
    %c0_19 = arith.constant 0 : index
    %c0_20 = arith.constant 0 : index
    %40 = vector.load %arg7[%c0_19, %c0_20] : memref<128x128xbf16, #tpu.memory_space<vmem>>, vector<32x128xbf16>
    %cst_21 = arith.constant dense<0.000000e+00> : vector<16x128xf32>
    %41 = tpu.matmul %39, %40, %cst_21 {dimension_numbers = #tpu.dot_dimension_numbers<[1], [0], [0], [1], [0, 0, 1, 1], [], []>} : vector<16x32xbf16>, vector<32x128xbf16>, vector<16x128xf32> -> vector<16x128xf32>
    %42 = arith.addf %22, %41 : vector<16x128xf32>
    %43 = vector.extract_strided_slice %18 {offsets = [0, 32], sizes = [16, 32], strides = [1, 1]} : vector<32x128xbf16> to vector<16x32xbf16>
    %44 = vector.extract_strided_slice %20 {offsets = [0, 32], sizes = [16, 32], strides = [1, 1]} : vector<32x128xbf16> to vector<16x32xbf16>
    %45 = vector.extract_strided_slice %21 {offsets = [0, 32], sizes = [16, 32], strides = [1, 1]} : vector<32x128xbf16> to vector<16x32xbf16>
    "tpu.trace_start"() <{level = 10 : i32, message = "qd,kd->qk"}> : () -> ()
    %cst_22 = arith.constant dense<0.000000e+00> : vector<16x16xf32>
    %46 = tpu.matmul %43, %44, %cst_22 {dimension_numbers = #tpu.dot_dimension_numbers<[1], [1], [0], [0], [0, 0, 1, 0], [], []>} : vector<16x32xbf16>, vector<16x32xbf16>, vector<16x16xf32> -> vector<16x16xf32>
    "tpu.trace_stop"() : () -> ()
    %cst_23 = arith.constant dense<0xFF800000> : vector<16xf32>
    %47 = vector.multi_reduction <maximumf>, %46, %cst_23 [1] : vector<16x16xf32> to vector<16xf32>
    %48 = vector.shape_cast %47 : vector<16xf32> to vector<16x1xf32>
    %49 = vector.broadcast %48 : vector<16x1xf32> to vector<16x16xf32>
    %50 = arith.subf %46, %49 : vector<16x16xf32>
    %51 = math.exp %50 : vector<16x16xf32>
    %cst_24 = arith.constant dense<0.000000e+00> : vector<16xf32>
    %52 = vector.multi_reduction <add>, %51, %cst_24 [1] : vector<16x16xf32> to vector<16xf32>
    %53 = vector.shape_cast %52 : vector<16xf32> to vector<16x1xf32>
    %54 = tpu.reciprocal %53 {approx = true} : vector<16x1xf32> -> vector<16x1xf32>
    %55 = vector.broadcast %54 : vector<16x1xf32> to vector<16x16xf32>
    %56 = arith.mulf %51, %55 : vector<16x16xf32>
    %57 = arith.truncf %56 : vector<16x16xf32> to vector<16x16xbf16>
    %cst_25 = arith.constant dense<0.000000e+00> : vector<16x32xf32>
    %58 = tpu.matmul %57, %45, %cst_25 {dimension_numbers = #tpu.dot_dimension_numbers<[1], [0], [0], [1], [0, 0, 1, 1], [], []>} : vector<16x16xbf16>, vector<16x32xbf16>, vector<16x32xf32> -> vector<16x32xf32>
    %59 = arith.truncf %58 : vector<16x32xf32> to vector<16x32xbf16>
    %c32 = arith.constant 32 : index
    %c0_26 = arith.constant 0 : index
    %60 = vector.load %arg7[%c32, %c0_26] : memref<128x128xbf16, #tpu.memory_space<vmem>>, vector<32x128xbf16>
    %cst_27 = arith.constant dense<0.000000e+00> : vector<16x128xf32>
    %61 = tpu.matmul %59, %60, %cst_27 {dimension_numbers = #tpu.dot_dimension_numbers<[1], [0], [0], [1], [0, 0, 1, 1], [], []>} : vector<16x32xbf16>, vector<32x128xbf16>, vector<16x128xf32> -> vector<16x128xf32>
    %62 = arith.addf %42, %61 : vector<16x128xf32>
    %63 = vector.extract_strided_slice %18 {offsets = [0, 64], sizes = [16, 32], strides = [1, 1]} : vector<32x128xbf16> to vector<16x32xbf16>
    %64 = vector.extract_strided_slice %20 {offsets = [0, 64], sizes = [16, 32], strides = [1, 1]} : vector<32x128xbf16> to vector<16x32xbf16>
    %65 = vector.extract_strided_slice %21 {offsets = [0, 64], sizes = [16, 32], strides = [1, 1]} : vector<32x128xbf16> to vector<16x32xbf16>
    "tpu.trace_start"() <{level = 10 : i32, message = "qd,kd->qk"}> : () -> ()
    %cst_28 = arith.constant dense<0.000000e+00> : vector<16x16xf32>
    %66 = tpu.matmul %63, %64, %cst_28 {dimension_numbers = #tpu.dot_dimension_numbers<[1], [1], [0], [0], [0, 0, 1, 0], [], []>} : vector<16x32xbf16>, vector<16x32xbf16>, vector<16x16xf32> -> vector<16x16xf32>
    "tpu.trace_stop"() : () -> ()
    %cst_29 = arith.constant dense<0xFF800000> : vector<16xf32>
    %67 = vector.multi_reduction <maximumf>, %66, %cst_29 [1] : vector<16x16xf32> to vector<16xf32>
    %68 = vector.shape_cast %67 : vector<16xf32> to vector<16x1xf32>
    %69 = vector.broadcast %68 : vector<16x1xf32> to vector<16x16xf32>
    %70 = arith.subf %66, %69 : vector<16x16xf32>
    %71 = math.exp %70 : vector<16x16xf32>
    %cst_30 = arith.constant dense<0.000000e+00> : vector<16xf32>
    %72 = vector.multi_reduction <add>, %71, %cst_30 [1] : vector<16x16xf32> to vector<16xf32>
    %73 = vector.shape_cast %72 : vector<16xf32> to vector<16x1xf32>
    %74 = tpu.reciprocal %73 {approx = true} : vector<16x1xf32> -> vector<16x1xf32>
    %75 = vector.broadcast %74 : vector<16x1xf32> to vector<16x16xf32>
    %76 = arith.mulf %71, %75 : vector<16x16xf32>
    %77 = arith.truncf %76 : vector<16x16xf32> to vector<16x16xbf16>
    %cst_31 = arith.constant dense<0.000000e+00> : vector<16x32xf32>
    %78 = tpu.matmul %77, %65, %cst_31 {dimension_numbers = #tpu.dot_dimension_numbers<[1], [0], [0], [1], [0, 0, 1, 1], [], []>} : vector<16x16xbf16>, vector<16x32xbf16>, vector<16x32xf32> -> vector<16x32xf32>
    %79 = arith.truncf %78 : vector<16x32xf32> to vector<16x32xbf16>
    %c64 = arith.constant 64 : index
    %c0_32 = arith.constant 0 : index
    %80 = vector.load %arg7[%c64, %c0_32] : memref<128x128xbf16, #tpu.memory_space<vmem>>, vector<32x128xbf16>
    %cst_33 = arith.constant dense<0.000000e+00> : vector<16x128xf32>
    %81 = tpu.matmul %79, %80, %cst_33 {dimension_numbers = #tpu.dot_dimension_numbers<[1], [0], [0], [1], [0, 0, 1, 1], [], []>} : vector<16x32xbf16>, vector<32x128xbf16>, vector<16x128xf32> -> vector<16x128xf32>
    %82 = arith.addf %62, %81 : vector<16x128xf32>
    %83 = vector.extract_strided_slice %18 {offsets = [0, 96], sizes = [16, 32], strides = [1, 1]} : vector<32x128xbf16> to vector<16x32xbf16>
    %84 = vector.extract_strided_slice %20 {offsets = [0, 96], sizes = [16, 32], strides = [1, 1]} : vector<32x128xbf16> to vector<16x32xbf16>
    %85 = vector.extract_strided_slice %21 {offsets = [0, 96], sizes = [16, 32], strides = [1, 1]} : vector<32x128xbf16> to vector<16x32xbf16>
    "tpu.trace_start"() <{level = 10 : i32, message = "qd,kd->qk"}> : () -> ()
    %cst_34 = arith.constant dense<0.000000e+00> : vector<16x16xf32>
    %86 = tpu.matmul %83, %84, %cst_34 {dimension_numbers = #tpu.dot_dimension_numbers<[1], [1], [0], [0], [0, 0, 1, 0], [], []>} : vector<16x32xbf16>, vector<16x32xbf16>, vector<16x16xf32> -> vector<16x16xf32>
    "tpu.trace_stop"() : () -> ()
    %cst_35 = arith.constant dense<0xFF800000> : vector<16xf32>
    %87 = vector.multi_reduction <maximumf>, %86, %cst_35 [1] : vector<16x16xf32> to vector<16xf32>
    %88 = vector.shape_cast %87 : vector<16xf32> to vector<16x1xf32>
    %89 = vector.broadcast %88 : vector<16x1xf32> to vector<16x16xf32>
    %90 = arith.subf %86, %89 : vector<16x16xf32>
    %91 = math.exp %90 : vector<16x16xf32>
    %cst_36 = arith.constant dense<0.000000e+00> : vector<16xf32>
    %92 = vector.multi_reduction <add>, %91, %cst_36 [1] : vector<16x16xf32> to vector<16xf32>
    %93 = vector.shape_cast %92 : vector<16xf32> to vector<16x1xf32>
    %94 = tpu.reciprocal %93 {approx = true} : vector<16x1xf32> -> vector<16x1xf32>
    %95 = vector.broadcast %94 : vector<16x1xf32> to vector<16x16xf32>
    %96 = arith.mulf %91, %95 : vector<16x16xf32>
    %97 = arith.truncf %96 : vector<16x16xf32> to vector<16x16xbf16>
    %cst_37 = arith.constant dense<0.000000e+00> : vector<16x32xf32>
    %98 = tpu.matmul %97, %85, %cst_37 {dimension_numbers = #tpu.dot_dimension_numbers<[1], [0], [0], [1], [0, 0, 1, 1], [], []>} : vector<16x16xbf16>, vector<16x32xbf16>, vector<16x32xf32> -> vector<16x32xf32>
    %99 = arith.truncf %98 : vector<16x32xf32> to vector<16x32xbf16>
    %c96 = arith.constant 96 : index
    %c0_38 = arith.constant 0 : index
    %100 = vector.load %arg7[%c96, %c0_38] : memref<128x128xbf16, #tpu.memory_space<vmem>>, vector<32x128xbf16>
    %cst_39 = arith.constant dense<0.000000e+00> : vector<16x128xf32>
    %101 = tpu.matmul %99, %100, %cst_39 {dimension_numbers = #tpu.dot_dimension_numbers<[1], [0], [0], [1], [0, 0, 1, 1], [], []>} : vector<16x32xbf16>, vector<32x128xbf16>, vector<16x128xf32> -> vector<16x128xf32>
    %102 = arith.addf %82, %101 : vector<16x128xf32>
    %cst_40 = arith.constant 0.000000e+00 : f32
    %103 = vector.broadcast %cst_40 : f32 to vector<16x128xf32>
    %104 = vector.extract_strided_slice %18 {offsets = [16, 0], sizes = [16, 32], strides = [1, 1]} : vector<32x128xbf16> to vector<16x32xbf16>
    %105 = vector.extract_strided_slice %20 {offsets = [16, 0], sizes = [16, 32], strides = [1, 1]} : vector<32x128xbf16> to vector<16x32xbf16>
    %106 = vector.extract_strided_slice %21 {offsets = [16, 0], sizes = [16, 32], strides = [1, 1]} : vector<32x128xbf16> to vector<16x32xbf16>
    "tpu.trace_start"() <{level = 10 : i32, message = "qd,kd->qk"}> : () -> ()
    %cst_41 = arith.constant dense<0.000000e+00> : vector<16x16xf32>
    %107 = tpu.matmul %104, %105, %cst_41 {dimension_numbers = #tpu.dot_dimension_numbers<[1], [1], [0], [0], [0, 0, 1, 0], [], []>} : vector<16x32xbf16>, vector<16x32xbf16>, vector<16x16xf32> -> vector<16x16xf32>
    "tpu.trace_stop"() : () -> ()
    %cst_42 = arith.constant dense<0xFF800000> : vector<16xf32>
    %108 = vector.multi_reduction <maximumf>, %107, %cst_42 [1] : vector<16x16xf32> to vector<16xf32>
    %109 = vector.shape_cast %108 : vector<16xf32> to vector<16x1xf32>
    %110 = vector.broadcast %109 : vector<16x1xf32> to vector<16x16xf32>
    %111 = arith.subf %107, %110 : vector<16x16xf32>
    %112 = math.exp %111 : vector<16x16xf32>
    %cst_43 = arith.constant dense<0.000000e+00> : vector<16xf32>
    %113 = vector.multi_reduction <add>, %112, %cst_43 [1] : vector<16x16xf32> to vector<16xf32>
    %114 = vector.shape_cast %113 : vector<16xf32> to vector<16x1xf32>
    %115 = tpu.reciprocal %114 {approx = true} : vector<16x1xf32> -> vector<16x1xf32>
    %116 = vector.broadcast %115 : vector<16x1xf32> to vector<16x16xf32>
    %117 = arith.mulf %112, %116 : vector<16x16xf32>
    %118 = arith.truncf %117 : vector<16x16xf32> to vector<16x16xbf16>
    %cst_44 = arith.constant dense<0.000000e+00> : vector<16x32xf32>
    %119 = tpu.matmul %118, %106, %cst_44 {dimension_numbers = #tpu.dot_dimension_numbers<[1], [0], [0], [1], [0, 0, 1, 1], [], []>} : vector<16x16xbf16>, vector<16x32xbf16>, vector<16x32xf32> -> vector<16x32xf32>
    %120 = arith.truncf %119 : vector<16x32xf32> to vector<16x32xbf16>
    %c0_45 = arith.constant 0 : index
    %c0_46 = arith.constant 0 : index
    %121 = vector.load %arg7[%c0_45, %c0_46] : memref<128x128xbf16, #tpu.memory_space<vmem>>, vector<32x128xbf16>
    %cst_47 = arith.constant dense<0.000000e+00> : vector<16x128xf32>
    %122 = tpu.matmul %120, %121, %cst_47 {dimension_numbers = #tpu.dot_dimension_numbers<[1], [0], [0], [1], [0, 0, 1, 1], [], []>} : vector<16x32xbf16>, vector<32x128xbf16>, vector<16x128xf32> -> vector<16x128xf32>
    %123 = arith.addf %103, %122 : vector<16x128xf32>
    %124 = vector.extract_strided_slice %18 {offsets = [16, 32], sizes = [16, 32], strides = [1, 1]} : vector<32x128xbf16> to vector<16x32xbf16>
    %125 = vector.extract_strided_slice %20 {offsets = [16, 32], sizes = [16, 32], strides = [1, 1]} : vector<32x128xbf16> to vector<16x32xbf16>
    %126 = vector.extract_strided_slice %21 {offsets = [16, 32], sizes = [16, 32], strides = [1, 1]} : vector<32x128xbf16> to vector<16x32xbf16>
    "tpu.trace_start"() <{level = 10 : i32, message = "qd,kd->qk"}> : () -> ()
    %cst_48 = arith.constant dense<0.000000e+00> : vector<16x16xf32>
    %127 = tpu.matmul %124, %125, %cst_48 {dimension_numbers = #tpu.dot_dimension_numbers<[1], [1], [0], [0], [0, 0, 1, 0], [], []>} : vector<16x32xbf16>, vector<16x32xbf16>, vector<16x16xf32> -> vector<16x16xf32>
    "tpu.trace_stop"() : () -> ()
    %cst_49 = arith.constant dense<0xFF800000> : vector<16xf32>
    %128 = vector.multi_reduction <maximumf>, %127, %cst_49 [1] : vector<16x16xf32> to vector<16xf32>
    %129 = vector.shape_cast %128 : vector<16xf32> to vector<16x1xf32>
    %130 = vector.broadcast %129 : vector<16x1xf32> to vector<16x16xf32>
    %131 = arith.subf %127, %130 : vector<16x16xf32>
    %132 = math.exp %131 : vector<16x16xf32>
    %cst_50 = arith.constant dense<0.000000e+00> : vector<16xf32>
    %133 = vector.multi_reduction <add>, %132, %cst_50 [1] : vector<16x16xf32> to vector<16xf32>
    %134 = vector.shape_cast %133 : vector<16xf32> to vector<16x1xf32>
    %135 = tpu.reciprocal %134 {approx = true} : vector<16x1xf32> -> vector<16x1xf32>
    %136 = vector.broadcast %135 : vector<16x1xf32> to vector<16x16xf32>
    %137 = arith.mulf %132, %136 : vector<16x16xf32>
    %138 = arith.truncf %137 : vector<16x16xf32> to vector<16x16xbf16>
    %cst_51 = arith.constant dense<0.000000e+00> : vector<16x32xf32>
    %139 = tpu.matmul %138, %126, %cst_51 {dimension_numbers = #tpu.dot_dimension_numbers<[1], [0], [0], [1], [0, 0, 1, 1], [], []>} : vector<16x16xbf16>, vector<16x32xbf16>, vector<16x32xf32> -> vector<16x32xf32>
    %140 = arith.truncf %139 : vector<16x32xf32> to vector<16x32xbf16>
    %c32_52 = arith.constant 32 : index
    %c0_53 = arith.constant 0 : index
    %141 = vector.load %arg7[%c32_52, %c0_53] : memref<128x128xbf16, #tpu.memory_space<vmem>>, vector<32x128xbf16>
    %cst_54 = arith.constant dense<0.000000e+00> : vector<16x128xf32>
    %142 = tpu.matmul %140, %141, %cst_54 {dimension_numbers = #tpu.dot_dimension_numbers<[1], [0], [0], [1], [0, 0, 1, 1], [], []>} : vector<16x32xbf16>, vector<32x128xbf16>, vector<16x128xf32> -> vector<16x128xf32>
    %143 = arith.addf %123, %142 : vector<16x128xf32>
    %144 = vector.extract_strided_slice %18 {offsets = [16, 64], sizes = [16, 32], strides = [1, 1]} : vector<32x128xbf16> to vector<16x32xbf16>
    %145 = vector.extract_strided_slice %20 {offsets = [16, 64], sizes = [16, 32], strides = [1, 1]} : vector<32x128xbf16> to vector<16x32xbf16>
    %146 = vector.extract_strided_slice %21 {offsets = [16, 64], sizes = [16, 32], strides = [1, 1]} : vector<32x128xbf16> to vector<16x32xbf16>
    "tpu.trace_start"() <{level = 10 : i32, message = "qd,kd->qk"}> : () -> ()
    %cst_55 = arith.constant dense<0.000000e+00> : vector<16x16xf32>
    %147 = tpu.matmul %144, %145, %cst_55 {dimension_numbers = #tpu.dot_dimension_numbers<[1], [1], [0], [0], [0, 0, 1, 0], [], []>} : vector<16x32xbf16>, vector<16x32xbf16>, vector<16x16xf32> -> vector<16x16xf32>
    "tpu.trace_stop"() : () -> ()
    %cst_56 = arith.constant dense<0xFF800000> : vector<16xf32>
    %148 = vector.multi_reduction <maximumf>, %147, %cst_56 [1] : vector<16x16xf32> to vector<16xf32>
    %149 = vector.shape_cast %148 : vector<16xf32> to vector<16x1xf32>
    %150 = vector.broadcast %149 : vector<16x1xf32> to vector<16x16xf32>
    %151 = arith.subf %147, %150 : vector<16x16xf32>
    %152 = math.exp %151 : vector<16x16xf32>
    %cst_57 = arith.constant dense<0.000000e+00> : vector<16xf32>
    %153 = vector.multi_reduction <add>, %152, %cst_57 [1] : vector<16x16xf32> to vector<16xf32>
    %154 = vector.shape_cast %153 : vector<16xf32> to vector<16x1xf32>
    %155 = tpu.reciprocal %154 {approx = true} : vector<16x1xf32> -> vector<16x1xf32>
    %156 = vector.broadcast %155 : vector<16x1xf32> to vector<16x16xf32>
    %157 = arith.mulf %152, %156 : vector<16x16xf32>
    %158 = arith.truncf %157 : vector<16x16xf32> to vector<16x16xbf16>
    %cst_58 = arith.constant dense<0.000000e+00> : vector<16x32xf32>
    %159 = tpu.matmul %158, %146, %cst_58 {dimension_numbers = #tpu.dot_dimension_numbers<[1], [0], [0], [1], [0, 0, 1, 1], [], []>} : vector<16x16xbf16>, vector<16x32xbf16>, vector<16x32xf32> -> vector<16x32xf32>
    %160 = arith.truncf %159 : vector<16x32xf32> to vector<16x32xbf16>
    %c64_59 = arith.constant 64 : index
    %c0_60 = arith.constant 0 : index
    %161 = vector.load %arg7[%c64_59, %c0_60] : memref<128x128xbf16, #tpu.memory_space<vmem>>, vector<32x128xbf16>
    %cst_61 = arith.constant dense<0.000000e+00> : vector<16x128xf32>
    %162 = tpu.matmul %160, %161, %cst_61 {dimension_numbers = #tpu.dot_dimension_numbers<[1], [0], [0], [1], [0, 0, 1, 1], [], []>} : vector<16x32xbf16>, vector<32x128xbf16>, vector<16x128xf32> -> vector<16x128xf32>
    %163 = arith.addf %143, %162 : vector<16x128xf32>
    %164 = vector.extract_strided_slice %18 {offsets = [16, 96], sizes = [16, 32], strides = [1, 1]} : vector<32x128xbf16> to vector<16x32xbf16>
    %165 = vector.extract_strided_slice %20 {offsets = [16, 96], sizes = [16, 32], strides = [1, 1]} : vector<32x128xbf16> to vector<16x32xbf16>
    %166 = vector.extract_strided_slice %21 {offsets = [16, 96], sizes = [16, 32], strides = [1, 1]} : vector<32x128xbf16> to vector<16x32xbf16>
    "tpu.trace_start"() <{level = 10 : i32, message = "qd,kd->qk"}> : () -> ()
    %cst_62 = arith.constant dense<0.000000e+00> : vector<16x16xf32>
    %167 = tpu.matmul %164, %165, %cst_62 {dimension_numbers = #tpu.dot_dimension_numbers<[1], [1], [0], [0], [0, 0, 1, 0], [], []>} : vector<16x32xbf16>, vector<16x32xbf16>, vector<16x16xf32> -> vector<16x16xf32>
    "tpu.trace_stop"() : () -> ()
    %cst_63 = arith.constant dense<0xFF800000> : vector<16xf32>
    %168 = vector.multi_reduction <maximumf>, %167, %cst_63 [1] : vector<16x16xf32> to vector<16xf32>
    %169 = vector.shape_cast %168 : vector<16xf32> to vector<16x1xf32>
    %170 = vector.broadcast %169 : vector<16x1xf32> to vector<16x16xf32>
    %171 = arith.subf %167, %170 : vector<16x16xf32>
    %172 = math.exp %171 : vector<16x16xf32>
    %cst_64 = arith.constant dense<0.000000e+00> : vector<16xf32>
    %173 = vector.multi_reduction <add>, %172, %cst_64 [1] : vector<16x16xf32> to vector<16xf32>
    %174 = vector.shape_cast %173 : vector<16xf32> to vector<16x1xf32>
    %175 = tpu.reciprocal %174 {approx = true} : vector<16x1xf32> -> vector<16x1xf32>
    %176 = vector.broadcast %175 : vector<16x1xf32> to vector<16x16xf32>
    %177 = arith.mulf %172, %176 : vector<16x16xf32>
    %178 = arith.truncf %177 : vector<16x16xf32> to vector<16x16xbf16>
    %cst_65 = arith.constant dense<0.000000e+00> : vector<16x32xf32>
    %179 = tpu.matmul %178, %166, %cst_65 {dimension_numbers = #tpu.dot_dimension_numbers<[1], [0], [0], [1], [0, 0, 1, 1], [], []>} : vector<16x16xbf16>, vector<16x32xbf16>, vector<16x32xf32> -> vector<16x32xf32>
    %180 = arith.truncf %179 : vector<16x32xf32> to vector<16x32xbf16>
    %c96_66 = arith.constant 96 : index
    %c0_67 = arith.constant 0 : index
    %181 = vector.load %arg7[%c96_66, %c0_67] : memref<128x128xbf16, #tpu.memory_space<vmem>>, vector<32x128xbf16>
    %cst_68 = arith.constant dense<0.000000e+00> : vector<16x128xf32>
    %182 = tpu.matmul %180, %181, %cst_68 {dimension_numbers = #tpu.dot_dimension_numbers<[1], [0], [0], [1], [0, 0, 1, 1], [], []>} : vector<16x32xbf16>, vector<32x128xbf16>, vector<16x128xf32> -> vector<16x128xf32>
    %183 = arith.addf %163, %182 : vector<16x128xf32>
    %184 = tpu.concatenate %102, %183 in 0 : vector<16x128xf32>, vector<16x128xf32> -> vector<32x128xf32>
    %c0_69 = arith.constant 0 : index
    %c0_70 = arith.constant 0 : index
    %185 = vector.load %arg8[%c0_69, %c0_70] : memref<1x128xf32, #tpu.memory_space<vmem>>, vector<1x128xf32>
    %186 = vector.broadcast %185 : vector<1x128xf32> to vector<32x128xf32>
    %187 = arith.addf %184, %186 : vector<32x128xf32>
    %188 = arith.addf %1, %187 : vector<32x128xf32>
    %c0_71 = arith.constant 0 : index
    %c0_72 = arith.constant 0 : index
    %189 = vector.load %arg13[%c0_71, %c0_72] : memref<1x128xf32, #tpu.memory_space<vmem>>, vector<1x128xf32>
    %c0_73 = arith.constant 0 : index
    %c0_74 = arith.constant 0 : index
    %190 = vector.load %arg14[%c0_73, %c0_74] : memref<1x128xf32, #tpu.memory_space<vmem>>, vector<1x128xf32>
    %cst_75 = arith.constant dense<0.000000e+00> : vector<32xf32>
    %191 = vector.multi_reduction <add>, %188, %cst_75 [1] : vector<32x128xf32> to vector<32xf32>
    %192 = vector.shape_cast %191 : vector<32xf32> to vector<32x1xf32>
    %cst_76 = arith.constant 1.280000e+02 : f32
    %193 = vector.broadcast %cst_76 : f32 to vector<32x1xf32>
    %194 = arith.divf %192, %193 : vector<32x1xf32>
    %195 = vector.broadcast %194 : vector<32x1xf32> to vector<32x128xf32>
    %196 = arith.subf %188, %195 : vector<32x128xf32>
    %197 = arith.mulf %196, %196 : vector<32x128xf32>
    %cst_77 = arith.constant dense<0.000000e+00> : vector<32xf32>
    %198 = vector.multi_reduction <add>, %197, %cst_77 [1] : vector<32x128xf32> to vector<32xf32>
    %199 = vector.shape_cast %198 : vector<32xf32> to vector<32x1xf32>
    %cst_78 = arith.constant 1.280000e+02 : f32
    %200 = vector.broadcast %cst_78 : f32 to vector<32x1xf32>
    %201 = arith.divf %199, %200 : vector<32x1xf32>
    %cst_79 = arith.constant 9.99999974E-6 : f32
    %202 = vector.broadcast %cst_79 : f32 to vector<32x1xf32>
    %203 = arith.addf %201, %202 : vector<32x1xf32>
    %204 = math.rsqrt %203 : vector<32x1xf32>
    %205 = vector.broadcast %204 : vector<32x1xf32> to vector<32x128xf32>
    %206 = arith.mulf %196, %205 : vector<32x128xf32>
    %207 = vector.broadcast %189 : vector<1x128xf32> to vector<32x128xf32>
    %208 = arith.mulf %206, %207 : vector<32x128xf32>
    %209 = vector.broadcast %190 : vector<1x128xf32> to vector<32x128xf32>
    %210 = arith.addf %208, %209 : vector<32x128xf32>
    %211 = arith.truncf %210 : vector<32x128xf32> to vector<32x128xbf16>
    %c0_80 = arith.constant 0 : index
    %c0_81 = arith.constant 0 : index
    %212 = vector.load %arg9[%c0_80, %c0_81] : memref<128x256xbf16, #tpu.memory_space<vmem>>, vector<128x256xbf16>
    %cst_82 = arith.constant dense<0.000000e+00> : vector<32x256xf32>
    %213 = tpu.matmul %211, %212, %cst_82 {dimension_numbers = #tpu.dot_dimension_numbers<[1], [0], [0], [1], [0, 0, 1, 1], [], []>} : vector<32x128xbf16>, vector<128x256xbf16>, vector<32x256xf32> -> vector<32x256xf32>
    %c0_83 = arith.constant 0 : index
    %c0_84 = arith.constant 0 : index
    %214 = vector.load %arg10[%c0_83, %c0_84] : memref<1x256xf32, #tpu.memory_space<vmem>>, vector<1x256xf32>
    %215 = vector.broadcast %214 : vector<1x256xf32> to vector<32x256xf32>
    %216 = arith.addf %213, %215 : vector<32x256xf32>
    %cst_85 = arith.constant 0.000000e+00 : f32
    %217 = vector.broadcast %cst_85 : f32 to vector<32x256xf32>
    %218 = arith.maximumf %216, %217 : vector<32x256xf32>
    %219 = arith.truncf %218 : vector<32x256xf32> to vector<32x256xbf16>
    %c0_86 = arith.constant 0 : index
    %c0_87 = arith.constant 0 : index
    %220 = vector.load %arg11[%c0_86, %c0_87] : memref<256x128xbf16, #tpu.memory_space<vmem>>, vector<256x128xbf16>
    %cst_88 = arith.constant dense<0.000000e+00> : vector<32x128xf32>
    %221 = tpu.matmul %219, %220, %cst_88 {dimension_numbers = #tpu.dot_dimension_numbers<[1], [0], [0], [1], [0, 0, 1, 1], [], []>} : vector<32x256xbf16>, vector<256x128xbf16>, vector<32x128xf32> -> vector<32x128xf32>
    %c0_89 = arith.constant 0 : index
    %c0_90 = arith.constant 0 : index
    %222 = vector.load %arg12[%c0_89, %c0_90] : memref<1x128xf32, #tpu.memory_space<vmem>>, vector<1x128xf32>
    %223 = vector.broadcast %222 : vector<1x128xf32> to vector<32x128xf32>
    %224 = arith.addf %221, %223 : vector<32x128xf32>
    %225 = arith.addf %210, %224 : vector<32x128xf32>
    %c0_91 = arith.constant 0 : index
    %c0_92 = arith.constant 0 : index
    %226 = vector.load %arg15[%c0_91, %c0_92] : memref<1x128xf32, #tpu.memory_space<vmem>>, vector<1x128xf32>
    %c0_93 = arith.constant 0 : index
    %c0_94 = arith.constant 0 : index
    %227 = vector.load %arg16[%c0_93, %c0_94] : memref<1x128xf32, #tpu.memory_space<vmem>>, vector<1x128xf32>
    %cst_95 = arith.constant dense<0.000000e+00> : vector<32xf32>
    %228 = vector.multi_reduction <add>, %225, %cst_95 [1] : vector<32x128xf32> to vector<32xf32>
    %229 = vector.shape_cast %228 : vector<32xf32> to vector<32x1xf32>
    %cst_96 = arith.constant 1.280000e+02 : f32
    %230 = vector.broadcast %cst_96 : f32 to vector<32x1xf32>
    %231 = arith.divf %229, %230 : vector<32x1xf32>
    %232 = vector.broadcast %231 : vector<32x1xf32> to vector<32x128xf32>
    %233 = arith.subf %225, %232 : vector<32x128xf32>
    %234 = arith.mulf %233, %233 : vector<32x128xf32>
    %cst_97 = arith.constant dense<0.000000e+00> : vector<32xf32>
    %235 = vector.multi_reduction <add>, %234, %cst_97 [1] : vector<32x128xf32> to vector<32xf32>
    %236 = vector.shape_cast %235 : vector<32xf32> to vector<32x1xf32>
    %cst_98 = arith.constant 1.280000e+02 : f32
    %237 = vector.broadcast %cst_98 : f32 to vector<32x1xf32>
    %238 = arith.divf %236, %237 : vector<32x1xf32>
    %cst_99 = arith.constant 9.99999974E-6 : f32
    %239 = vector.broadcast %cst_99 : f32 to vector<32x1xf32>
    %240 = arith.addf %238, %239 : vector<32x1xf32>
    %241 = math.rsqrt %240 : vector<32x1xf32>
    %242 = vector.broadcast %241 : vector<32x1xf32> to vector<32x128xf32>
    %243 = arith.mulf %233, %242 : vector<32x128xf32>
    %244 = vector.broadcast %226 : vector<1x128xf32> to vector<32x128xf32>
    %245 = arith.mulf %243, %244 : vector<32x128xf32>
    %246 = vector.broadcast %227 : vector<1x128xf32> to vector<32x128xf32>
    %247 = arith.addf %245, %246 : vector<32x128xf32>
    %248 = vector.shape_cast %247 : vector<32x128xf32> to vector<2x16x128xf32>
    %c0_100 = arith.constant 0 : index
    %c0_101 = arith.constant 0 : index
    %c0_102 = arith.constant 0 : index
    %249 = vector.load %arg17[%c0_100, %c0_101, %c0_102] : memref<2x16x128xf32, #tpu.memory_space<vmem>>, vector<2x16x128xf32>
    tpu.vector_store %arg17[%c0_100, %c0_101, %c0_102], %248 {strides = array<i32>} : memref<2x16x128xf32, #tpu.memory_space<vmem>>, vector<2x16x128xf32>,
    return
  }
  func.func @transform_0(%arg0: i32) -> (i32, i32, i32) {
    %c0_i32 = arith.constant 0 : i32
    %c0_i32_0 = arith.constant 0 : i32
    %c0_i32_1 = arith.constant 0 : i32
    return %arg0, %c0_i32, %c0_i32_0 : i32, i32, i32
  }
  func.func @transform_1(%arg0: i32) -> (i32, i32, i32) {
    %c0_i32 = arith.constant 0 : i32
    %c0_i32_0 = arith.constant 0 : i32
    %c0_i32_1 = arith.constant 0 : i32
    return %arg0, %c0_i32, %c0_i32_0 : i32, i32, i32
  }
  func.func @transform_2(%arg0: i32) -> (i32, i32) {
    %c0_i32 = arith.constant 0 : i32
    %c0_i32_0 = arith.constant 0 : i32
    %c0_i32_1 = arith.constant 0 : i32
    return %c0_i32, %c0_i32_0 : i32, i32
  }
  func.func @transform_3(%arg0: i32) -> (i32, i32) {
    %c0_i32 = arith.constant 0 : i32
    %c0_i32_0 = arith.constant 0 : i32
    %c0_i32_1 = arith.constant 0 : i32
    return %c0_i32, %c0_i32_0 : i32, i32
  }
  func.func @transform_4(%arg0: i32) -> (i32, i32) {
    %c0_i32 = arith.constant 0 : i32
    %c0_i32_0 = arith.constant 0 : i32
    %c0_i32_1 = arith.constant 0 : i32
    return %c0_i32, %c0_i32_0 : i32, i32
  }
  func.func @transform_5(%arg0: i32) -> (i32, i32) {
    %c0_i32 = arith.constant 0 : i32
    %c0_i32_0 = arith.constant 0 : i32
    %c0_i32_1 = arith.constant 0 : i32
    return %c0_i32, %c0_i32_0 : i32, i32
  }
  func.func @transform_6(%arg0: i32) -> (i32, i32) {
    %c0_i32 = arith.constant 0 : i32
    %c0_i32_0 = arith.constant 0 : i32
    %c0_i32_1 = arith.constant 0 : i32
    return %c0_i32, %c0_i32_0 : i32, i32
  }
  func.func @transform_7(%arg0: i32) -> (i32, i32) {
    %c0_i32 = arith.constant 0 : i32
    %c0_i32_0 = arith.constant 0 : i32
    %c0_i32_1 = arith.constant 0 : i32
    return %c0_i32, %c0_i32_0 : i32, i32
  }
  func.func @transform_8(%arg0: i32) -> (i32, i32) {
    %c0_i32 = arith.constant 0 : i32
    %c0_i32_0 = arith.constant 0 : i32
    %c0_i32_1 = arith.constant 0 : i32
    return %c0_i32, %c0_i32_0 : i32, i32
  }
  func.func @transform_9(%arg0: i32) -> (i32, i32) {
    %c0_i32 = arith.constant 0 : i32
    %c0_i32_0 = arith.constant 0 : i32
    %c0_i32_1 = arith.constant 0 : i32
    return %c0_i32, %c0_i32_0 : i32, i32
  }
  func.func @transform_10(%arg0: i32) -> (i32, i32) {
    %c0_i32 = arith.constant 0 : i32
    %c0_i32_0 = arith.constant 0 : i32
    %c0_i32_1 = arith.constant 0 : i32
    return %c0_i32, %c0_i32_0 : i32, i32
  }
  func.func @transform_11(%arg0: i32) -> (i32, i32) {
    %c0_i32 = arith.constant 0 : i32
    %c0_i32_0 = arith.constant 0 : i32
    %c0_i32_1 = arith.constant 0 : i32
    return %c0_i32, %c0_i32_0 : i32, i32
  }
  func.func @transform_12(%arg0: i32) -> (i32, i32) {
    %c0_i32 = arith.constant 0 : i32
    %c0_i32_0 = arith.constant 0 : i32
    %c0_i32_1 = arith.constant 0 : i32
    return %c0_i32, %c0_i32_0 : i32, i32
  }
  func.func @transform_13(%arg0: i32) -> (i32, i32) {
    %c0_i32 = arith.constant 0 : i32
    %c0_i32_0 = arith.constant 0 : i32
    %c0_i32_1 = arith.constant 0 : i32
    return %c0_i32, %c0_i32_0 : i32, i32
  }
  func.func @transform_14(%arg0: i32) -> (i32, i32) {
    %c0_i32 = arith.constant 0 : i32
    %c0_i32_0 = arith.constant 0 : i32
    %c0_i32_1 = arith.constant 0 : i32
    return %c0_i32, %c0_i32_0 : i32, i32
  }
  func.func @transform_15(%arg0: i32) -> (i32, i32) {
    %c0_i32 = arith.constant 0 : i32
    %c0_i32_0 = arith.constant 0 : i32
    %c0_i32_1 = arith.constant 0 : i32
    return %c0_i32, %c0_i32_0 : i32, i32
  }
  func.func @transform_16(%arg0: i32) -> (i32, i32, i32) {
    %c0_i32 = arith.constant 0 : i32
    %c0_i32_0 = arith.constant 0 : i32
    %c0_i32_1 = arith.constant 0 : i32
    return %arg0, %c0_i32, %c0_i32_0 : i32, i32, i32
  }
}

</mosaic_0001>

<bundles_post_ra>
// kernel: tpu_custom_call.1
= control target key start
LH: loop header
LB: loop body
LE: loop exit
PB: predicated region body
PF: predicated region fallthrough
CT: control target
= control target key end

     0   :  { %s3742_s0 = inlined_call_operand.hbm [shape: f32[2,16,128], index: 0, kind: input, shape index: {}]   ;;  %s3743_s1 = inlined_call_operand.hbm [shape: f32[2,16,128], index: 1, kind: input, shape index: {}]   ;;  %s3744_s2 = inlined_call_operand.hbm [shape: bf16[128,256], index: 2, kind: input, shape index: {}]   ;;  %s3745_s3 = inlined_call_operand.vmem [shape: f32[1,256], index: 3, kind: input, shape index: {}]   ;;  %s3746_s4 = inlined_call_operand.hbm [shape: bf16[128,128], index: 4, kind: input, shape index: {}]   ;;  %s3747_s5 = inlined_call_operand.vmem [shape: f32[1,128], index: 5, kind: input, shape index: {}]   ;;  %s3748_s6 = inlined_call_operand.hbm [shape: bf16[128,128], index: 6, kind: input, shape index: {}]   ;;  %s3749_s7 = inlined_call_operand.vmem [shape: f32[1,128], index: 7, kind: input, shape index: {}]   ;;  %s3750_s8 = inlined_call_operand.hbm [shape: bf16[128,256], index: 8, kind: input, shape index: {}]   ;;  %s3751_s9 = inlined_call_operand.vmem [shape: f32[1,256], index: 9, kind: input, shape index: {}]   ;;  %s3752_s10 = inlined_call_operand.hbm [shape: bf16[256,128], index: 10, kind: input, shape index: {}]   ;;  %s3753_s11 = inlined_call_operand.vmem [shape: f32[1,128], index: 11, kind: input, shape index: {}]   ;;  %s3754_s12 = inlined_call_operand.vmem [shape: f32[1,128], index: 12, kind: input, shape index: {}]   ;;  %s3755_s13 = inlined_call_operand.vmem [shape: f32[1,128], index: 13, kind: input, shape index: {}]   ;;  %s3756_s14 = inlined_call_operand.vmem [shape: f32[1,128], index: 14, kind: input, shape index: {}]   ;;  %s3757_s15 = inlined_call_operand.vmem [shape: f32[1,128], index: 15, kind: input, shape index: {}]   ;;  %s3758_s16 = inlined_call_operand.hbm [shape: f32[2,16,128], index: 16, kind: output, shape index: {}]  }
   0x1   :  { %3766 = sst [smem:[#allocation20_spill]] %s3742_s0 }
   0x2   :  { %21 = vsyncpa [#allocation3], 0 }
   0x3   :  { %22 = vsyncpa [#allocation6], 0 }
   0x4   :  { %23 = vsyncpa [#allocation9], 0 }
   0x5   :  { %24 = vsyncpa [#allocation12], 0 }
   0x6   :  { %25 = vsyncpa [#allocation4], 0  ;;  %s3196_s21 = smov [#allocation5]   ;;  %s3197_s23 = smov [#allocation8]  }
   0x7   :  { %s43_s22 = sshll.u32 %s3196_s21, 4  ;;  %s69_s24 = sshll.u32 %s3197_s23, 4  ;;  %s44_s22 = int_to_ptr.vmem [resolvable:$true] %s43_s22  ;;  %s3298_s24 = int_to_ptr.vmem [resolvable:$true] %s69_s24 }
   0x8   :  { %s3010_s27 = scalar_lea.hbm %s3743_s1, 512 }
   0x9   :  { %p3011_p0 = scmp.ne.s32.totalorder %s3743_s1, %s3010_s27  ;;  %p3014_p1 = scmp.lt.u32.totalorder %s3010_s27, %s3743_s1 }
   0xb   :  { %p3016_p2 = pnand %p3014_p1, %p3011_p0 }
   0xd   :  { %3019 = shalt.err (!%p3016_p2)
}
   0xe   :  { %s3020_s17 = scalar_lea.vmem %s44_s22, 512  ;;  %p3025_p4 = scmp.lt.s32.totalorder %s44_s22, %s44_s22 }
   0xf   :  { %p3021_p3 = scmp.ne.s32.totalorder %s44_s22, %s3020_s17  ;;  %p3026_p5 = scmp.lt.s32.totalorder %s3020_s17, %s3020_s17 }
  0x11   :  { %p3027_p6 = por %p3026_p5, %p3025_p4 }
  0x13   :  { %p3028_p7 = pnand %p3027_p6, %p3021_p3 }
  0x15   :  { %3031 = shalt.err (!%p3028_p7)
}
  0x16   :  { %s3760_s18 = smov 128   ;;  %s3762_s19 = smov 8  }
  0x17   :  { %49 = dma.hbm_to_vmem [thread:$0]  %s3743_s1, 512, %s44_s22, [#allocation6], %s3760_s18, %s3760_s18, %s3762_s19  }
  0x18   :  { %s3032_s26 = scalar_lea.hbm %s3746_s4, 1024 }
  0x19   :  { %p3033_p8 = scmp.ne.s32.totalorder %s3746_s4, %s3032_s26  ;;  %p3036_p9 = scmp.lt.u32.totalorder %s3032_s26, %s3746_s4 }
  0x1b   :  { %p3038_p10 = pnand %p3036_p9, %p3033_p8 }
  0x1d   :  { %3041 = shalt.err (!%p3038_p10)
}
  0x1e   :  { %s3042_s0 = scalar_lea.vmem %s3298_s24, 1024  ;;  %p3047_p12 = scmp.lt.s32.totalorder %s3298_s24, %s3298_s24 }
  0x1f   :  { %p3043_p11 = scmp.ne.s32.totalorder %s3298_s24, %s3042_s0  ;;  %p3048_p13 = scmp.lt.s32.totalorder %s3042_s0, %s3042_s0 }
  0x21   :  { %p3049_p0 = por %p3048_p13, %p3047_p12 }
  0x23   :  { %p3050_p1 = pnand %p3049_p0, %p3043_p11 }
  0x25   :  { %3053 = shalt.err (!%p3050_p1)
}
  0x26   :  { %s3764_s1 = smov 64   ;;  %s3201_s22 = smov 4  }
  0x27   :  { %75 = dma.hbm_to_vmem [thread:$0]  %s3746_s4, 1024, %s3298_s24, [#allocation9], %s3764_s1, %s3764_s1, %s3201_s22  }
  0x28   :  { %s3202_s21 = smov [#allocation11]   ;;  %s3203_s25 = smov [#allocation2]  }
  0x29   :  { %s97_s23 = sshll.u32 %s3202_s21, 4  ;;  %s31_s26 = sshll.u32 %s3203_s25, 4  ;;  %s98_s23 = int_to_ptr.vmem [resolvable:$true] %s97_s23  ;;  %s3335_s26 = int_to_ptr.vmem [resolvable:$true] %s31_s26 }
  0x2a   :  { %s3054_s29 = scalar_lea.hbm %s3750_s8, 2048 }
  0x2b   :  { %p3055_p2 = scmp.ne.s32.totalorder %s3750_s8, %s3054_s29  ;;  %p3058_p3 = scmp.lt.u32.totalorder %s3054_s29, %s3750_s8 }
  0x2d   :  { %p3060_p4 = pnand %p3058_p3, %p3055_p2 }
  0x2f   :  { %3063 = shalt.err (!%p3060_p4)
}
  0x30   :  { %s3064_s4 = scalar_lea.vmem %s98_s23, 2048  ;;  %p3069_p6 = scmp.lt.s32.totalorder %s98_s23, %s98_s23 }
  0x31   :  { %p3065_p5 = scmp.ne.s32.totalorder %s98_s23, %s3064_s4  ;;  %p3070_p7 = scmp.lt.s32.totalorder %s3064_s4, %s3064_s4 }
  0x33   :  { %p3071_p8 = por %p3070_p7, %p3069_p6 }
  0x35   :  { %p3072_p9 = pnand %p3071_p8, %p3065_p5 }
  0x37   :  { %3075 = shalt.err (!%p3072_p9)
}
  0x38   :  { %s3767_s24 = smov 8   ;;  %s3768_s17 = smov 128  }
  0x39   :  { %103 = dma.hbm_to_vmem [thread:$0]  %s3750_s8, 2048, %s98_s23, [#allocation12], %s3768_s17, %s3768_s17, %s3767_s24  }
  0x3a   :  { %s3769_s18 = sld [smem:[#allocation20_spill]] }
  0x40   :  { %s3076_s19 = scalar_lea.hbm %s3769_s18, 512 }
  0x41   :  { %p3077_p10 = scmp.ne.s32.totalorder %s3769_s18, %s3076_s19  ;;  %p3080_p11 = scmp.lt.u32.totalorder %s3076_s19, %s3769_s18 }
  0x43   :  { %p3082_p12 = pnand %p3080_p11, %p3077_p10 }
  0x45   :  { %3085 = shalt.err (!%p3082_p12)
}
  0x46   :  { %s3086_s4 = scalar_lea.vmem %s3335_s26, 512  ;;  %p3091_p0 = scmp.lt.s32.totalorder %s3335_s26, %s3335_s26 }
  0x47   :  { %p3087_p13 = scmp.ne.s32.totalorder %s3335_s26, %s3086_s4  ;;  %p3092_p1 = scmp.lt.s32.totalorder %s3086_s4, %s3086_s4 }
  0x49   :  { %p3093_p2 = por %p3092_p1, %p3091_p0 }
  0x4b   :  { %p3094_p3 = pnand %p3093_p2, %p3087_p13 }
  0x4d   :  { %3097 = shalt.err (!%p3094_p3)
}
  0x4e   :  { %37 = dma.hbm_to_vmem [thread:$0]  %s3769_s18, 512, %s3335_s26, [#allocation3], %s3768_s17, %s3768_s17, %s3767_s24  }
  0x4f   :  { %s3204_s20 = smov [#allocation7]   ;;  %s3205_s25 = smov [#allocation10]  }
  0x50   :  { %s55_s21 = sshll.u32 %s3204_s20, 4  ;;  %s83_s27 = sshll.u32 %s3205_s25, 4  ;;  %s56_s21 = int_to_ptr.vmem [resolvable:$true] %s55_s21  ;;  %s3372_s27 = int_to_ptr.vmem [resolvable:$true] %s83_s27 }
  0x51   :  { %s3098_s29 = scalar_lea.hbm %s3744_s2, 2048 }
  0x52   :  { %p3099_p4 = scmp.ne.s32.totalorder %s3744_s2, %s3098_s29  ;;  %p3102_p5 = scmp.lt.u32.totalorder %s3098_s29, %s3744_s2 }
  0x54   :  { %p3104_p6 = pnand %p3102_p5, %p3099_p4 }
  0x56   :  { %3107 = shalt.err (!%p3104_p6)
}
  0x57   :  { %s3108_s26 = scalar_lea.vmem %s56_s21, 2048  ;;  %p3113_p8 = scmp.lt.s32.totalorder %s56_s21, %s56_s21 }
  0x58   :  { %p3109_p7 = scmp.ne.s32.totalorder %s56_s21, %s3108_s26  ;;  %p3114_p9 = scmp.lt.s32.totalorder %s3108_s26, %s3108_s26 }
  0x5a   :  { %p3115_p10 = por %p3114_p9, %p3113_p8 }
  0x5c   :  { %p3116_p11 = pnand %p3115_p10, %p3109_p7 }
  0x5e   :  { %3119 = shalt.err (!%p3116_p11)
}
  0x5f   :  { %61 = dma.hbm_to_vmem [thread:$0]  %s3744_s2, 2048, %s56_s21, [#allocation6], %s3768_s17, %s3768_s17, %s3767_s24  }
  0x60   :  { %s3120_s1 = scalar_lea.hbm %s3748_s6, 1024 }
  0x61   :  { %p3121_p12 = scmp.ne.s32.totalorder %s3748_s6, %s3120_s1  ;;  %p3124_p13 = scmp.lt.u32.totalorder %s3120_s1, %s3748_s6 }
  0x63   :  { %p3126_p0 = pnand %p3124_p13, %p3121_p12 }
  0x65   :  { %3129 = shalt.err (!%p3126_p0)
}
  0x66   :  { %s3130_s30 = scalar_lea.vmem %s3372_s27, 1024  ;;  %p3135_p2 = scmp.lt.s32.totalorder %s3372_s27, %s3372_s27 }
  0x67   :  { %p3131_p1 = scmp.ne.s32.totalorder %s3372_s27, %s3130_s30  ;;  %p3136_p3 = scmp.lt.s32.totalorder %s3130_s30, %s3130_s30 }
  0x69   :  { %p3137_p4 = por %p3136_p3, %p3135_p2 }
  0x6b   :  { %p3138_p5 = pnand %p3137_p4, %p3131_p1 }
  0x6d   :  { %3141 = shalt.err (!%p3138_p5)
}
  0x6e   :  { %s3770_s2 = smov 64   ;;  %s3206_s4 = smov [#allocation13]  }
  0x6f   :  { %89 = dma.hbm_to_vmem [thread:$0]  %s3748_s6, 1024, %s3372_s27, [#allocation9], %s3770_s2, %s3770_s2, %s3201_s22  }
  0x70   :  { %s111_s26 = sshll.u32 %s3206_s4, 4  ;;  %s3142_s23 = scalar_lea.hbm %s3752_s10, 2048  ;;  %s112_s26 = int_to_ptr.vmem [resolvable:$true] %s111_s26 }
  0x71   :  { %p3143_p6 = scmp.ne.s32.totalorder %s3752_s10, %s3142_s23  ;;  %p3146_p7 = scmp.lt.u32.totalorder %s3142_s23, %s3752_s10 }
  0x73   :  { %p3148_p8 = pnand %p3146_p7, %p3143_p6 }
  0x75   :  { %3151 = shalt.err (!%p3148_p8)
}
  0x76   :  { %s3152_s28 = scalar_lea.vmem %s112_s26, 2048  ;;  %p3157_p10 = scmp.lt.s32.totalorder %s112_s26, %s112_s26 }
  0x77   :  { %p3153_p9 = scmp.ne.s32.totalorder %s112_s26, %s3152_s28  ;;  %p3158_p11 = scmp.lt.s32.totalorder %s3152_s28, %s3152_s28 }
  0x79   :  { %p3159_p12 = por %p3158_p11, %p3157_p10 }
  0x7b   :  { %p3160_p13 = pnand %p3159_p12, %p3153_p9 }
  0x7d   :  { %3163 = shalt.err (!%p3160_p13)
}
  0x7e   :  { %117 = dma.hbm_to_vmem [thread:$0]  %s3752_s10, 2048, %s112_s26, [#allocation12], %s3770_s2, %s3770_s2, %s3201_s22  }
  0x7f   :  { %3186 = dma.done.wait [#allocation3], 512  }
  0x80   :  { %3187 = vsyncadd [#allocation3], 4294966784 }
  0x81   :  { %3188 = dma.done.wait [#allocation6], 2560  }
  0x82   :  { %3189 = vsyncadd [#allocation6], 4294964736 }
  0x83   :  { %3190 = dma.done.wait [#allocation9], 2048  }
  0x84   :  { %3191 = vsyncadd [#allocation9], 4294965248 }
  0x85   :  { %3192 = dma.done.wait [#allocation12], 4096  }
  0x86   :  { %3193 = vsyncadd [#allocation12], 4294963200  ;;  %v3207_v0 = vmov 0   ;;  %v2838_v1 = vld [vmem:[#allocation7 + $0x4] ss:$8 sps:$4 sm:$0xff]   ;;  %v2864_v17 = vld [vmem:[#allocation8 + $0x10] sm:$0xff]   ;;  %v182_v36 = vlaneseq }
  0x87   :  { %304 = vmatprep.mubr.bf16.mxu0 %v3207_v0  ;;  %v2840_v2 = vld [vmem:[#allocation7] ss:$8 sps:$4 sm:$0xff]   ;;  %272 = vmatprep.subr.bf16.mxu0 %v2838_v1  ;;  %v2841_v3 = vld [vmem:[#allocation7 + $0x14] ss:$8 sps:$4 sm:$0xff]   ;;  %v2843_v4 = vld [vmem:[#allocation7 + $0x10] ss:$8 sps:$4 sm:$0xff]  }
  0x88   :  { %273 = vmatpush1.bf16.msra.mxu0 %v2840_v2  ;;  %v2844_v5 = vld [vmem:[#allocation7 + $0x24] ss:$8 sps:$4 sm:$0xff]   ;;  %v2846_v6 = vld [vmem:[#allocation7 + $0x20] ss:$8 sps:$4 sm:$0xff]   ;;  %v2847_v7 = vld [vmem:[#allocation7 + $0x34] ss:$8 sps:$4 sm:$0xff]  }
  0x89   :  { %274 = vmatprep.subr.bf16.mxu0 %v2841_v3  ;;  %v150_v8 = vld [vmem:[#allocation2] sm:$0xff]  ;;  %v2849_v9 = vld [vmem:[#allocation7 + $0x30] ss:$8 sps:$4 sm:$0xff]   ;;  %v151_v11 = vld [vmem:[#allocation2 + $0x8] sm:$0xff]  ;;  %v3208_v35 = vmov 0.0   ;;  %vm3209_vm0 = vmmov 0  }
  0x8a   :  { %v2850_v10 = vld [vmem:[#allocation7 + $0x44] ss:$8 sps:$4 sm:$0xff]   ;;  %v154_v12 = vpack.c.bf16 %v151_v11, %v150_v8  ;;  %v2852_v15 = vld [vmem:[#allocation7 + $0x40] ss:$8 sps:$4 sm:$0xff]   ;;  %v2853_v16 = vld [vmem:[#allocation7 + $0x54] ss:$8 sps:$4 sm:$0xff]  }
  0x8b   :  { %v2862_v13 = vld [vmem:[#allocation8] sm:$0xff]   ;;  %v2863_v14 = vld [vmem:[#allocation8 + $0x8] sm:$0xff]   ;;  %v2855_v18 = vld [vmem:[#allocation7 + $0x50] ss:$8 sps:$4 sm:$0xff]   ;;  %v3433_v37 = vshrl.u32 %v182_v36, 7  ;;  %vm451_vm1 = vcmask 261120  }
  0x8c   :  { %275 = vmatpush1.bf16.msra.mxu0 %v2843_v4  ;;  %2641 = vmatprep.subr.bf16.mxu1 %v2862_v13  ;;  %v2856_v19 = vld [vmem:[#allocation7 + $0x64] ss:$8 sps:$4 sm:$0xff]   ;;  %v2865_v20 = vld [vmem:[#allocation8 + $0x18] sm:$0xff]   ;;  %v2858_v21 = vld [vmem:[#allocation7 + $0x60] ss:$8 sps:$4 sm:$0xff]   ;;  %vm499_vm2 = vcmask 130048  }
  0x8d   :  { %276 = vmatprep.subr.bf16.mxu0 %v2844_v5  ;;  %2657 = vmatprep.mubr.bf16.mxu1 %v154_v12  ;;  %v156_v22 = vld [vmem:[#allocation5] sm:$0xff]  ;;  %v157_v23 = vld [vmem:[#allocation5 + $0x8] sm:$0xff]  ;;  %v2859_v24 = vld [vmem:[#allocation7 + $0x74] ss:$8 sps:$4 sm:$0xff]   ;;  %v184_v38 = vsub.s32 0, %v3433_v37  ;;  %v188_v40 = vsub.s32 1, %v3433_v37 }
  0x8e   :  { %2642 = vmatpush3.bf16.msra.mxu1 %v2862_v13  ;;  %v2866_v25 = vld [vmem:[#allocation8 + $0x20] sm:$0xff]   ;;  %v2861_v26 = vld [vmem:[#allocation7 + $0x70] ss:$8 sps:$4 sm:$0xff]   ;;  %v160_v27 = vpack.c.bf16 %v157_v23, %v156_v22  ;;  %v2867_v28 = vld [vmem:[#allocation8 + $0x28] sm:$0xff]  }
  0x8f   :  { %2643 = vmatprep.subr.bf16.mxu1 %v2863_v14  ;;  %v2868_v30 = vld [vmem:[#allocation8 + $0x30] sm:$0xff]   ;;  %v2869_v31 = vld [vmem:[#allocation8 + $0x38] sm:$0xff]   ;;  %v180_v39 = vld [vmem:[%s3745_s3] sm:$0x3]  ;;  %s3210_s3 = smov 96  }
  0x90   :  { %277 = vmatpush1.bf16.msra.mxu0 %v2846_v6  ;;  %v162_v29 = vadd.bf16 %v160_v27, %v154_v12  ;;  %v152_v32 = vld [vmem:[#allocation2 + $0x10] sm:$0xff]  ;;  %v153_v33 = vld [vmem:[#allocation2 + $0x18] sm:$0xff]  ;;  %v3442_v41 = vrot.slane %v180_v39, %v184_v38  ;;  %v3446_v43 = vrot.slane %v180_v39, %v188_v40  ;;  %v2460_v54 = vld [vmem:[%s3747_s5] ss:$0 sm:$0xff]  ;;  %s3211_s5 = smov 32  }
  0x91   :  { %278 = vmatprep.subr.bf16.mxu0 %v2847_v7  ;;  %v3426_v34 = vpack.c.bf16 %v153_v33, %v152_v32  ;;  %v158_v27 = vld [vmem:[#allocation5 + $0x10] sm:$0xff] }
  0x92   :  { %2644 = vmatpush3.bf16.msra.mxu1 %v2863_v14 }
  0x93   :  { %2645 = vmatprep.subr.bf16.mxu1 %v2864_v17 }
  0x94   :  { %279 = vmatpush1.bf16.msra.mxu0 %v2849_v9 }
  0x95   :  { %280 = vmatprep.subr.bf16.mxu0 %v2850_v10 }
  0x96   :  { %2646 = vmatpush3.bf16.msra.mxu1 %v2864_v17 }
  0x97   :  { %2647 = vmatprep.subr.bf16.mxu1 %v2865_v20 }
  0x98   :  { %281 = vmatpush1.bf16.msra.mxu0 %v2852_v15 }
  0x99   :  { %282 = vmatprep.subr.bf16.mxu0 %v2853_v16 }
  0x9a   :  { %2648 = vmatpush3.bf16.msra.mxu1 %v2865_v20 }
  0x9b   :  { %2649 = vmatprep.subr.bf16.mxu1 %v2866_v25 }
  0x9c   :  { %283 = vmatpush1.bf16.msra.mxu0 %v2855_v18 }
  0x9d   :  { %284 = vmatprep.subr.bf16.mxu0 %v2856_v19 }
  0x9e   :  { %2650 = vmatpush3.bf16.msra.mxu1 %v2866_v25 }
  0x9f   :  { %2651 = vmatprep.subr.bf16.mxu1 %v2867_v28 }
  0xa0   :  { %285 = vmatpush1.bf16.msra.mxu0 %v2858_v21 }
  0xa1   :  { %286 = vmatprep.subr.bf16.mxu0 %v2859_v24 }
  0xa2   :  { %2652 = vmatpush3.bf16.msra.mxu1 %v2867_v28  ;;  %v159_v28 = vld [vmem:[#allocation5 + $0x18] sm:$0xff] }
  0xa3   :  { %2653 = vmatprep.subr.bf16.mxu1 %v2868_v30 }
  0xa4   :  { %287 = vmatpush1.bf16.msra.mxu0 %v2861_v26 }
  0xa5   :  { %2667 = vmatprep.subr.bf16.mxu0 %v3208_v35 }
  0xa6   :  { %2654 = vmatpush3.bf16.msra.mxu1 %v2868_v30 }
  0xa7   :  { %305 = vmatmul.mubr.bf16.vlgmr.msra.gmra.mrb[0].mxu0 %v162_v29  ;;  %2655 = vmatprep.subr.bf16.mxu1 %v2869_v31  ;;  %v161_v29 = vpack.c.bf16 %v159_v28, %v158_v27 }
  0xa8   :  { %314 = vmatprep.mubr.bf16.mxu0 %v3207_v0 }
  0xa9   :  { %v163_v30 = vadd.bf16 %v161_v29, %v3426_v34 }
  0xaa   :  { %2656 = vmatpush3.bf16.msra.mxu1 %v2869_v31 }
  0xab   :  { %2661 = vmatprep.subr.bf16.mxu1 %v3208_v35 }
  0xad   :  { %2658 = vmatmul.mubr.bf16.vlgmr.msra.gmra.mrb[0].mxu1 %v3426_v34 }
  0xae   :  { %2663 = vmatprep.mubr.msk.bf16.mxu1 %vm3209_vm0, %v3208_v35 }
  0xaf   :  { %315 = vmatmul.mubr.bf16.gmra.mrb[4].mxu0 %v163_v30 }
  0xb0   :  { %2669 = vmatprep.mubr.msk.bf16.mxu0 %vm3209_vm0, %v3208_v35 }
 0x17a   :  { %v306_v42 = vpop.f32.mrb[0].mxu0 }
 0x17b   :  { %v308_v44 = vpop.f32.mrb[1].mxu0  ;;  %v307_v46 = vadd.f32 %v306_v42, %v3442_v41 }
 0x17c   :  { %v310_v45 = vpop.f32.mrb[2].mxu0  ;;  %v309_v49 = vadd.f32 %v308_v44, %v3446_v43 }
 0x17d   :  { %v311_v47 = vadd.f32 %v310_v45, %v3442_v41  ;;  %v312_v48 = vpop.f32.mrb[3].mxu0 }
 0x17e   :  { %v313_v50 = vadd.f32 %v312_v48, %v3446_v43 }
 0x17f   :  { %v3452_v51 = vpack.c.bf16 %v311_v47, %v307_v46 }
 0x180   :  { %v3454_v52 = vpack.c.bf16 %v313_v50, %v309_v49  ;;  %v2659_v55 = vpop.f32.mrb[0].mxu1 }
 0x181   :  { %v439_v56 = vadd.f32 %v2659_v55, %v2460_v54  ;;  %v430_v57 = vpop.f32.mrb[1].mxu1 }
 0x182   :  { %576 = vrot.lane.b32.xlu0 %v3454_v52, %s3210_s3  ;;  %v456_v53 = vsel %vm451_vm1, %v3454_v52, 0  ;;  %v431_v58 = vadd.f32 %v2460_v54, %v430_v57  ;;  %v2660_v59 = vpop.f32.mrb[2].mxu1 }
 0x183   :  { %2662 = vmatpush3.bf16.xpose.msra.mxu1 %v456_v53  ;;  %v442_v60 = vadd.f32 %v2660_v59, %v2460_v54  ;;  %v433_v61 = vpop.f32.mrb[3].mxu1 }
 0x184   :  { %2673 = vmatprep.subr.bf16.mxu1 %v3208_v35  ;;  %v434_v62 = vadd.f32 %v2460_v54, %v433_v61 }
 0x185   :  { %v3470_v63 = vpack.c.bf16 %v442_v60, %v439_v56  ;;  %v316_v56 = vpop.f32.mrb[4].mxu0 }
 0x186   :  { %573 = vrot.lane.b32.xlu0 %v3452_v51, %s3210_s3  ;;  %v3472_v1 = vpack.c.bf16 %v434_v62, %v431_v58  ;;  %v317_v57 = vadd.f32 %v316_v56, %v3442_v41  ;;  %v318_v58 = vpop.f32.mrb[5].mxu0 }
 0x187   :  { %v319_v59 = vadd.f32 %v318_v58, %v3446_v43  ;;  %v320_v60 = vpop.f32.mrb[6].mxu0 }
 0x188   :  { %2668 = vmatpush3.bf16.msra.mxu0 %v3472_v1  ;;  %v321_v61 = vadd.f32 %v320_v60, %v3442_v41  ;;  %v322_v62 = vpop.f32.mrb[7].mxu0 }
 0x189   :  { %2679 = vmatprep.subr.bf16.mxu0 %v3208_v35 }
 0x18a   :  { %2664 = vmatmul.mubr.msk.bf16.vlgmr.msra.gmra.mrb[4].mxu1 %vm451_vm1, %v3452_v51 }
 0x18b   :  { %2675 = vmatprep.mubr.msk.bf16.mxu1 %vm3209_vm0, %v3208_v35 }
 0x1f4   :  { %v577_v2 = vpop.permute.xlu0 %576 }
 0x1f5   :  { %v582_v3 = vsel %vm451_vm1, %v577_v2, 0  ;;  %v323_v2 = vadd.f32 %v322_v62, %v3446_v43 }
 0x1f6   :  { %2674 = vmatpush3.bf16.xpose.msra.mxu1 %v582_v3  ;;  %v3505_v3 = vpack.c.bf16 %v321_v61, %v317_v57 }
 0x1f7   :  { %2685 = vmatprep.subr.bf16.mxu1 %v3208_v35 }
 0x1f8   :  { %v574_v4 = vpop.permute.xlu0 %573 }
 0x1fd   :  { %2676 = vmatmul.mubr.msk.bf16.vlgmr.msra.gmra.mrb[8].mxu1 %vm451_vm1, %v574_v4  ;;  %v3507_v4 = vpack.c.bf16 %v323_v2, %v319_v59  ;;  %v2874_v2 = vld [vmem:[#allocation10 + $0x20] sm:$0xff]  }
 0x1fe   :  { %2689 = vmatprep.mubr.msk.bf16.mxu1 %vm3209_vm0, %v3208_v35 }
 0x25d   :  { %v492_v5 = vpop.f32.mrb[4].mxu1 }
 0x25e   :  { %v2665_v6 = vpop.f32.mrb[5].mxu1  ;;  %v500_v7 = vsel %vm499_vm2, %v492_v5, -inf }
 0x25f   :  { %501 = vmax.xlane.f32.xlu1 %v500_v7  ;;  %v495_v8 = vpop.f32.mrb[6].mxu1  ;;  %v2873_v6 = vld [vmem:[#allocation10 + $0x18] sm:$0xff]  }
 0x260   :  { %v2666_v9 = vpop.f32.mrb[7].mxu1  ;;  %v503_v10 = vsel %vm499_vm2, %v495_v8, -inf }
 0x263   :  { %504 = vmax.xlane.f32.xlu1 %v503_v10 }
 0x2d0   :  { %v618_v11 = vpop.f32.mrb[8].mxu1 }
 0x2d1   :  { %v2677_v12 = vpop.f32.mrb[9].mxu1  ;;  %v625_v13 = vsel %vm499_vm2, %v618_v11, -inf }
 0x2d2   :  { %626 = vmax.xlane.f32.xlu0 %v625_v13  ;;  %v621_v14 = vpop.f32.mrb[10].mxu1  ;;  %v2870_v12 = vld [vmem:[#allocation10] sm:$0xff]  }
 0x2d3   :  { %v2678_v15 = vpop.f32.mrb[11].mxu1  ;;  %v628_v16 = vsel %vm499_vm2, %v621_v14, -inf }
 0x2d4   :  { %629 = vmax.xlane.f32.xlu1 %v628_v16 }
 0x2e8   :  { %815 = vrot.lane.b32.xlu0 %v3454_v52, %s3770_s2 }
 0x2ec   :  { %v502_v17 = vpop.xlane.xlu1 %501 }
 0x2ed   :  { %v506_v18 = vsub.f32 %v492_v5, %v502_v17  ;;  %v2872_v5 = vld [vmem:[#allocation10 + $0x10] sm:$0xff]  }
 0x2ee   :  { %2686 = vmatpush3.bf16.msra.mxu1 %v2872_v5 }
 0x2ef   :  { %v508_v19 = vmul.f32 1.442695, %v506_v18  ;;  %2687 = vmatprep.subr.bf16.mxu1 %v3208_v35 }
 0x2f0   :  { %v505_v20 = vpop.xlane.xlu1 %504 }
 0x2f1   :  { %2926 = vpow2.f32 %v508_v19  ;;  %v507_v21 = vsub.f32 %v495_v8, %v505_v20 }
 0x2f2   :  { %2688 = vmatpush3.bf16.msra.mxu1 %v2873_v6 }
 0x2f3   :  { %v510_v22 = vmul.f32 1.442695, %v507_v21  ;;  %2701 = vmatprep.subr.bf16.mxu1 %v3208_v35 }
 0x2f5   :  { %2928 = vpow2.f32 %v510_v22 }
 0x2fb   :  { %v2927_v23 = vpop.eup %2926 }
 0x2fc   :  { %v512_v24 = vsel %vm499_vm2, %v2927_v23, 0.0 }
 0x2fd   :  { %513 = vadd.xlane.f32.xlu1 %v512_v24 }
 0x2ff   :  { %v2929_v25 = vpop.eup %2928 }
 0x300   :  { %v515_v26 = vsel %vm499_vm2, %v2929_v25, 0.0 }
 0x301   :  { %516 = vadd.xlane.f32.xlu1 %v515_v26 }
 0x35f   :  { %v627_v31 = vpop.xlane.xlu0 %626 }
 0x360   :  { %v631_v32 = vsub.f32 %v618_v11, %v627_v31 }
 0x361   :  { %v630_v33 = vpop.xlane.xlu1 %629 }
 0x362   :  { %v633_v36 = vmul.f32 1.442695, %v631_v32  ;;  %v632_v39 = vsub.f32 %v621_v14, %v630_v33  ;;  %v2871_v14 = vld [vmem:[#allocation10 + $0x8] sm:$0xff]  }
 0x363   :  { %v816_v22 = vpop.permute.xlu0 %815 }
 0x364   :  { %2930 = vpow2.f32 %v633_v36  ;;  %v635_v42 = vmul.f32 1.442695, %v632_v39  ;;  %v821_v26 = vsel %vm451_vm1, %v816_v22, 0 }
 0x366   :  { %2932 = vpow2.f32 %v635_v42 }
 0x36e   :  { %v2931_v44 = vpop.eup %2930 }
 0x36f   :  { %v637_v45 = vsel %vm499_vm2, %v2931_v44, 0.0 }
 0x370   :  { %v2933_v46 = vpop.eup %2932  ;;  %638 = vadd.xlane.f32.xlu1 %v637_v45 }
 0x371   :  { %v640_v47 = vsel %vm499_vm2, %v2933_v46, 0.0 }
 0x374   :  { %641 = vadd.xlane.f32.xlu1 %v640_v47 }
 0x385   :  { %649 = vrot.lane.b32.xlu1 %v3472_v1, %s3210_s3 }
 0x389   :  { %813 = vrot.lane.b32.xlu1 %v3452_v51, %s3770_s2 }
 0x38a   :  { %v514_v34 = vpop.xlane.xlu1 %513 }
 0x38b   :  { %2934 = vrcp.f32 %v514_v34 }
 0x38e   :  { %v517_v48 = vpop.xlane.xlu1 %516 }
 0x38f   :  { %2936 = vrcp.f32 %v517_v48 }
 0x395   :  { %v2935_v49 = vpop.eup %2934 }
 0x396   :  { %v520_v53 = vmul.f32 %v2935_v49, %v2927_v23 }
 0x399   :  { %v2937_v50 = vpop.eup %2936 }
 0x39a   :  { %v521_v54 = vmul.f32 %v2937_v50, %v2929_v25 }
 0x39c   :  { %v522_v55 = vpack.c.bf16 %v521_v54, %v520_v53 }
 0x39e   :  { %2670 = vmatmul.mubr.msk.bf16.vlgmr.msra.gmra.mrb[8].mxu0 %vm499_vm2, %v522_v55 }
 0x39f   :  { %2681 = vmatprep.mubr.msk.bf16.mxu0 %vm3209_vm0, %v3208_v35 }
 0x3fd   :  { %v639_v7 = vpop.xlane.xlu1 %638 }
 0x3fe   :  { %2938 = vrcp.f32 %v639_v7 }
 0x401   :  { %v642_v8 = vpop.xlane.xlu1 %641 }
 0x402   :  { %2940 = vrcp.f32 %v642_v8 }
 0x405   :  { %v650_v41 = vpop.permute.xlu1 %649 }
 0x406   :  { %2680 = vmatpush3.bf16.msra.mxu0 %v650_v41 }
 0x407   :  { %2693 = vmatprep.subr.bf16.mxu0 %v3208_v35 }
 0x408   :  { %v2939_v43 = vpop.eup %2938 }
 0x409   :  { %v645_v10 = vmul.f32 %v2939_v43, %v2931_v44  ;;  %v814_v27 = vpop.permute.xlu1 %813 }
 0x40c   :  { %v2941_v9 = vpop.eup %2940 }
 0x40d   :  { %v646_v11 = vmul.f32 %v2941_v9, %v2933_v46 }
 0x40f   :  { %v647_v13 = vpack.c.bf16 %v646_v11, %v645_v10 }
 0x411   :  { %2682 = vmatmul.mubr.msk.bf16.vlgmr.msra.gmra.mrb[12].mxu0 %vm499_vm2, %v647_v13 }
 0x412   :  { %2694 = vmatpush3.bf16.msra.mxu0 %v2870_v12  ;;  %2697 = vmatprep.mubr.msk.bf16.mxu0 %vm3209_vm0, %v3208_v35 }
 0x413   :  { %2695 = vmatprep.subr.bf16.mxu0 %v3208_v35 }
 0x416   :  { %2696 = vmatpush3.bf16.msra.mxu0 %v2871_v14 }
 0x417   :  { %2707 = vmatprep.subr.bf16.mxu0 %v3208_v35 }
 0x471   :  { %v560_v15 = vpop.f32.mrb[8].mxu0 }
 0x472   :  { %v2671_v16 = vpop.f32.mrb[9].mxu0 }
 0x473   :  { %v563_v17 = vpop.f32.mrb[10].mxu0 }
 0x474   :  { %v567_v18 = vpack.c.bf16 %v563_v17, %v560_v15  ;;  %v2672_v19 = vpop.f32.mrb[11].mxu0 }
 0x476   :  { %2698 = vmatmul.mubr.msk.bf16.vlgmr.msra.gmra.mrb[16].mxu0 %vm451_vm1, %v567_v18 }
 0x477   :  { %2709 = vmatprep.mubr.msk.bf16.mxu0 %vm3209_vm0, %v3208_v35 }
 0x4e4   :  { %v689_v20 = vpop.f32.mrb[12].mxu0 }
 0x4e5   :  { %v2683_v21 = vpop.f32.mrb[13].mxu0 }
 0x4e6   :  { %v692_v23 = vpop.f32.mrb[14].mxu0 }
 0x4e7   :  { %v696_v24 = vpack.c.bf16 %v692_v23, %v689_v20  ;;  %v2684_v25 = vpop.f32.mrb[15].mxu0 }
 0x4e9   :  { %2690 = vmatmul.mubr.msk.bf16.vlgmr.msra.gmra.mrb[12].mxu1 %vm451_vm1, %v696_v24 }
 0x4ea   :  { %2702 = vmatpush3.bf16.xpose.msra.mxu1 %v821_v26  ;;  %2703 = vmatprep.mubr.msk.bf16.mxu1 %vm3209_vm0, %v3208_v35 }
 0x4eb   :  { %2713 = vmatprep.subr.bf16.mxu1 %v3208_v35 }
 0x4f1   :  { %2704 = vmatmul.mubr.msk.bf16.vlgmr.msra.gmra.mrb[16].mxu1 %vm451_vm1, %v814_v27 }
 0x4f2   :  { %2717 = vmatprep.mubr.msk.bf16.mxu1 %vm3209_vm0, %v3208_v35  ;;  %2714 = vmatpush3.bf16.msra.mxu1 %v2874_v2 }
 0x4f3   :  { %2715 = vmatprep.subr.bf16.mxu1 %v3208_v35 }
 0x549   :  { %v806_v28 = vpop.f32.mrb[16].mxu0 }
 0x54a   :  { %v2699_v29 = vpop.f32.mrb[17].mxu0 }
 0x54b   :  { %v809_v30 = vpop.f32.mrb[18].mxu0 }
 0x54c   :  { %v2700_v31 = vpop.f32.mrb[19].mxu0 }
 0x5bc   :  { %v750_v32 = vpop.f32.mrb[12].mxu1 }
 0x5bd   :  { %v3528_v33 = vadd.f32 %v806_v28, %v750_v32  ;;  %v2691_v36 = vpop.f32.mrb[13].mxu1 }
 0x5be   :  { %v753_v39 = vpop.f32.mrb[14].mxu1 }
 0x5bf   :  { %v3530_v42 = vadd.f32 %v809_v30, %v753_v39  ;;  %v2692_v44 = vpop.f32.mrb[15].mxu1 }
 0x5c4   :  { %v857_v45 = vpop.f32.mrb[16].mxu1 }
 0x5c5   :  { %v2705_v46 = vpop.f32.mrb[17].mxu1  ;;  %v864_v47 = vsel %vm499_vm2, %v857_v45, -inf }
 0x5c6   :  { %865 = vmax.xlane.f32.xlu1 %v864_v47  ;;  %v860_v34 = vpop.f32.mrb[18].mxu1 }
 0x5c7   :  { %v2706_v48 = vpop.f32.mrb[19].mxu1  ;;  %v867_v49 = vsel %vm499_vm2, %v860_v34, -inf }
 0x5c8   :  { %868 = vmax.xlane.f32.xlu0 %v867_v49 }
 0x5de   :  { %887 = vrot.lane.b32.xlu0 %v3472_v1, %s3770_s2 }
 0x653   :  { %v866_v50 = vpop.xlane.xlu1 %865 }
 0x654   :  { %v870_v53 = vsub.f32 %v857_v45, %v866_v50  ;;  %v2876_v45 = vld [vmem:[#allocation10 + $0x30] sm:$0xff]  }
 0x655   :  { %v869_v54 = vpop.xlane.xlu0 %868 }
 0x656   :  { %v872_v55 = vmul.f32 1.442695, %v870_v53  ;;  %v871_v56 = vsub.f32 %v860_v34, %v869_v54 }
 0x658   :  { %2942 = vpow2.f32 %v872_v55  ;;  %v874_v57 = vmul.f32 1.442695, %v871_v56  ;;  %v1185_v56 = vsel %vm451_vm1, %v3507_v4, 0 }
 0x659   :  { %v888_v58 = vpop.permute.xlu0 %887 }
 0x65a   :  { %2944 = vpow2.f32 %v874_v57  ;;  %2708 = vmatpush3.bf16.msra.mxu0 %v888_v58 }
 0x65b   :  { %2721 = vmatprep.subr.bf16.mxu0 %v3208_v35 }
 0x662   :  { %v2943_v59 = vpop.eup %2942 }
 0x663   :  { %v876_v60 = vsel %vm499_vm2, %v2943_v59, 0.0 }
 0x664   :  { %v2945_v61 = vpop.eup %2944  ;;  %877 = vadd.xlane.f32.xlu1 %v876_v60 }
 0x665   :  { %v879_v62 = vsel %vm499_vm2, %v2945_v61, 0.0 }
 0x668   :  { %880 = vadd.xlane.f32.xlu1 %v879_v62 }
 0x679   :  { %999 = vrot.lane.b32.xlu1 %v3454_v52, %s3211_s5  ;;  %v2875_v52 = vld [vmem:[#allocation10 + $0x28] sm:$0xff]  }
 0x67a   :  { %2716 = vmatpush3.bf16.msra.mxu1 %v2875_v52 }
 0x67b   :  { %2727 = vmatprep.subr.bf16.mxu1 %v3208_v35 }
 0x67d   :  { %997 = vrot.lane.b32.xlu1 %v3452_v51, %s3211_s5 }
 0x6f1   :  { %v878_v5 = vpop.xlane.xlu1 %877 }
 0x6f2   :  { %2946 = vrcp.f32 %v878_v5 }
 0x6f5   :  { %v881_v6 = vpop.xlane.xlu1 %880 }
 0x6f6   :  { %2948 = vrcp.f32 %v881_v6 }
 0x6f9   :  { %v1000_v9 = vpop.permute.xlu1 %999 }
 0x6fa   :  { %v1005_v11 = vsel %vm451_vm1, %v1000_v9, 0 }
 0x6fc   :  { %v2947_v7 = vpop.eup %2946 }
 0x6fd   :  { %v884_v41 = vmul.f32 %v2947_v7, %v2943_v59  ;;  %v998_v51 = vpop.permute.xlu1 %997  ;;  %v2877_v59 = vld [vmem:[#allocation10 + $0x38] sm:$0xff]  }
 0x700   :  { %v2949_v8 = vpop.eup %2948 }
 0x701   :  { %v885_v43 = vmul.f32 %v2949_v8, %v2945_v61 }
 0x703   :  { %v886_v10 = vpack.c.bf16 %v885_v43, %v884_v41 }
 0x705   :  { %2710 = vmatmul.mubr.msk.bf16.vlgmr.msra.gmra.mrb[20].mxu0 %vm499_vm2, %v886_v10 }
 0x706   :  { %2722 = vmatpush3.bf16.xpose.msra.mxu0 %v1005_v11  ;;  %2723 = vmatprep.mubr.msk.bf16.mxu0 %vm3209_vm0, %v3208_v35 }
 0x707   :  { %2733 = vmatprep.subr.bf16.mxu0 %v3208_v35 }
 0x70d   :  { %2724 = vmatmul.mubr.msk.bf16.vlgmr.msra.gmra.mrb[24].mxu0 %vm451_vm1, %v998_v51 }
 0x70e   :  { %2737 = vmatprep.mubr.msk.bf16.mxu0 %vm3209_vm0, %v3208_v35  ;;  %2734 = vmatpush3.bf16.msra.mxu0 %v2876_v45 }
 0x70f   :  { %2735 = vmatprep.subr.bf16.mxu0 %v3208_v35 }
 0x712   :  { %2736 = vmatpush3.bf16.msra.mxu0 %v2877_v59 }
 0x713   :  { %2747 = vmatprep.subr.bf16.mxu0 %v3208_v35 }
 0x7d8   :  { %v927_v12 = vpop.f32.mrb[20].mxu0 }
 0x7d9   :  { %v2711_v13 = vpop.f32.mrb[21].mxu0 }
 0x7da   :  { %v930_v14 = vpop.f32.mrb[22].mxu0 }
 0x7db   :  { %v934_v15 = vpack.c.bf16 %v930_v14, %v927_v12  ;;  %v2712_v16 = vpop.f32.mrb[23].mxu0 }
 0x7dd   :  { %2718 = vmatmul.mubr.msk.bf16.vlgmr.msra.gmra.mrb[20].mxu1 %vm451_vm1, %v934_v15 }
 0x7de   :  { %2729 = vmatprep.mubr.msk.bf16.mxu1 %vm3209_vm0, %v3208_v35 }
 0x7e0   :  { %v1041_v17 = vpop.f32.mrb[24].mxu0 }
 0x7e1   :  { %v2725_v18 = vpop.f32.mrb[25].mxu0  ;;  %v1048_v19 = vsel %vm499_vm2, %v1041_v17, -inf }
 0x7e2   :  { %1049 = vmax.xlane.f32.xlu0 %v1048_v19  ;;  %v1044_v20 = vpop.f32.mrb[26].mxu0 }
 0x7e3   :  { %v2726_v21 = vpop.f32.mrb[27].mxu0  ;;  %v1051_v22 = vsel %vm499_vm2, %v1044_v20, -inf }
 0x7e4   :  { %1052 = vmax.xlane.f32.xlu1 %v1051_v22 }
 0x7f5   :  { %1071 = vrot.lane.b32.xlu1 %v3472_v1, %s3211_s5 }
 0x7f9   :  { %1301 = vrot.lane.b32.xlu1 %v3505_v3, %s3210_s3 }
 0x86f   :  { %v1050_v23 = vpop.xlane.xlu0 %1049 }
 0x870   :  { %v1054_v24 = vsub.f32 %v1041_v17, %v1050_v23 }
 0x871   :  { %v1053_v25 = vpop.xlane.xlu1 %1052 }
 0x872   :  { %v1056_v26 = vmul.f32 1.442695, %v1054_v24  ;;  %v1055_v27 = vsub.f32 %v1044_v20, %v1053_v25 }
 0x874   :  { %2950 = vpow2.f32 %v1056_v26  ;;  %v1058_v28 = vmul.f32 1.442695, %v1055_v27 }
 0x875   :  { %v1072_v29 = vpop.permute.xlu1 %1071 }
 0x876   :  { %2952 = vpow2.f32 %v1058_v28  ;;  %2728 = vmatpush3.bf16.msra.mxu1 %v1072_v29 }
 0x877   :  { %2741 = vmatprep.subr.bf16.mxu1 %v3208_v35 }
 0x879   :  { %v1302_v58 = vpop.permute.xlu1 %1301 }
 0x87e   :  { %v2951_v30 = vpop.eup %2950 }
 0x87f   :  { %v1060_v31 = vsel %vm499_vm2, %v2951_v30, 0.0 }
 0x880   :  { %v2953_v32 = vpop.eup %2952  ;;  %1061 = vadd.xlane.f32.xlu0 %v1060_v31 }
 0x881   :  { %v1063_v1 = vsel %vm499_vm2, %v2953_v32, 0.0 }
 0x884   :  { %1064 = vadd.xlane.f32.xlu0 %v1063_v1 }
 0x89a   :  { %1304 = vrot.lane.b32.xlu0 %v3507_v4, %s3210_s3 }
 0x8b0   :  { %v988_v36 = vpop.f32.mrb[20].mxu1 }
 0x8b1   :  { %v3568_v39 = vadd.f32 %v988_v36, %v3528_v33  ;;  %v2719_v44 = vpop.f32.mrb[21].mxu1 }
 0x8b2   :  { %v991_v46 = vpop.f32.mrb[22].mxu1 }
 0x8b3   :  { %v3571_v47 = vadd.f32 %v991_v46, %v3530_v42  ;;  %v2720_v34 = vpop.f32.mrb[23].mxu1 }
 0x90d   :  { %v1062_v48 = vpop.xlane.xlu0 %1061 }
 0x90e   :  { %2954 = vrcp.f32 %v1062_v48 }
 0x911   :  { %v1065_v49 = vpop.xlane.xlu0 %1064 }
 0x912   :  { %2956 = vrcp.f32 %v1065_v49 }
 0x915   :  { %v1305_v42 = vpop.permute.xlu0 %1304 }
 0x916   :  { %v1310_v57 = vsel %vm451_vm1, %v1305_v42, 0 }
 0x918   :  { %v2955_v50 = vpop.eup %2954 }
 0x919   :  { %v1068_v54 = vmul.f32 %v2955_v50, %v2951_v30 }
 0x91c   :  { %v2957_v53 = vpop.eup %2956 }
 0x91d   :  { %v1069_v55 = vmul.f32 %v2957_v53, %v2953_v32 }
 0x91f   :  { %v1070_v33 = vpack.c.bf16 %v1069_v55, %v1068_v54 }
 0x921   :  { %2730 = vmatmul.mubr.msk.bf16.vlgmr.msra.gmra.mrb[24].mxu1 %vm499_vm2, %v1070_v33 }
 0x922   :  { %2742 = vmatpush3.bf16.xpose.msra.mxu1 %v1185_v56  ;;  %2743 = vmatprep.mubr.msk.bf16.mxu1 %vm3209_vm0, %v3208_v35 }
 0x923   :  { %2753 = vmatprep.subr.bf16.mxu1 %v3208_v35 }
 0x929   :  { %2744 = vmatmul.mubr.msk.bf16.vlgmr.msra.gmra.mrb[28].mxu1 %vm451_vm1, %v3505_v3 }
 0x92a   :  { %2754 = vmatpush3.bf16.xpose.msra.mxu1 %v1310_v57  ;;  %2755 = vmatprep.mubr.msk.bf16.mxu1 %vm3209_vm0, %v3208_v35 }
 0x92b   :  { %2765 = vmatprep.subr.bf16.mxu1 %v3208_v35 }
 0x931   :  { %2756 = vmatmul.mubr.msk.bf16.vlgmr.msra.gmra.mrb[32].mxu1 %vm451_vm1, %v1302_v58 }
 0x932   :  { %2769 = vmatprep.mubr.msk.bf16.mxu1 %vm3209_vm0, %v3208_v35 }
 0x9f4   :  { %v1111_v60 = vpop.f32.mrb[24].mxu1 }
 0x9f5   :  { %v2731_v61 = vpop.f32.mrb[25].mxu1 }
 0x9f6   :  { %v1114_v62 = vpop.f32.mrb[26].mxu1  ;;  %v2878_v61 = vld [vmem:[#allocation10] sm:$0xff]  }
 0x9f7   :  { %v1118_v2 = vpack.c.bf16 %v1114_v62, %v1111_v60  ;;  %v2732_v5 = vpop.f32.mrb[27].mxu1 }
 0x9f8   :  { %v2880_v5 = vld [vmem:[#allocation10 + $0x8] sm:$0xff]  }
 0x9f9   :  { %2738 = vmatmul.mubr.msk.bf16.vlgmr.msra.gmra.mrb[28].mxu0 %vm451_vm1, %v1118_v2  ;;  %v2879_v2 = vld [vmem:[#allocation10 + $0x10] sm:$0xff]  }
 0x9fa   :  { %2748 = vmatpush3.bf16.msra.mxu0 %v3470_v63  ;;  %2749 = vmatprep.mubr.msk.bf16.mxu0 %vm3209_vm0, %v3208_v35 }
 0x9fb   :  { %2759 = vmatprep.subr.bf16.mxu0 %v3208_v35  ;;  %2766 = vmatpush3.bf16.msra.mxu1 %v2879_v2 }
 0x9fc   :  { %v1221_v6 = vpop.f32.mrb[28].mxu1  ;;  %2767 = vmatprep.subr.bf16.mxu1 %v3208_v35 }
 0x9fd   :  { %v2745_v7 = vpop.f32.mrb[29].mxu1  ;;  %v1228_v8 = vsel %vm499_vm2, %v1221_v6, -inf }
 0x9fe   :  { %1229 = vmax.xlane.f32.xlu1 %v1228_v8  ;;  %v1224_v41 = vpop.f32.mrb[30].mxu1 }
 0x9ff   :  { %v2746_v43 = vpop.f32.mrb[31].mxu1  ;;  %v1231_v9 = vsel %vm499_vm2, %v1224_v41, -inf }
 0xa00   :  { %1232 = vmax.xlane.f32.xlu0 %v1231_v9 }
 0xa04   :  { %v1346_v10 = vpop.f32.mrb[32].mxu1 }
 0xa05   :  { %v2757_v11 = vpop.f32.mrb[33].mxu1  ;;  %v1353_v51 = vsel %vm499_vm2, %v1346_v10, -inf }
 0xa06   :  { %1354 = vmax.xlane.f32.xlu0 %v1353_v51  ;;  %v1349_v52 = vpop.f32.mrb[34].mxu1 }
 0xa07   :  { %v2758_v12 = vpop.f32.mrb[35].mxu1  ;;  %v1356_v13 = vsel %vm499_vm2, %v1349_v52, -inf }
 0xa08   :  { %1357 = vmax.xlane.f32.xlu1 %v1356_v13 }
 0xa8b   :  { %v1230_v14 = vpop.xlane.xlu1 %1229 }
 0xa8c   :  { %v1234_v15 = vsub.f32 %v1221_v6, %v1230_v14  ;;  %v2881_v6 = vld [vmem:[#allocation10 + $0x18] sm:$0xff]  }
 0xa8d   :  { %v1233_v16 = vpop.xlane.xlu0 %1232  ;;  %2768 = vmatpush3.bf16.msra.mxu1 %v2881_v6 }
 0xa8e   :  { %v1236_v17 = vmul.f32 1.442695, %v1234_v15  ;;  %v1235_v18 = vsub.f32 %v1224_v41, %v1233_v16  ;;  %2781 = vmatprep.subr.bf16.mxu1 %v3208_v35 }
 0xa90   :  { %2958 = vpow2.f32 %v1236_v17  ;;  %v1238_v19 = vmul.f32 1.442695, %v1235_v18 }
 0xa92   :  { %2960 = vpow2.f32 %v1238_v19 }
 0xa93   :  { %v1355_v20 = vpop.xlane.xlu0 %1354 }
 0xa94   :  { %v1359_v21 = vsub.f32 %v1346_v10, %v1355_v20 }
 0xa95   :  { %v1358_v22 = vpop.xlane.xlu1 %1357 }
 0xa96   :  { %v1361_v23 = vmul.f32 1.442695, %v1359_v21  ;;  %v1360_v24 = vsub.f32 %v1349_v52, %v1358_v22 }
 0xa98   :  { %2962 = vpow2.f32 %v1361_v23  ;;  %v1363_v25 = vmul.f32 1.442695, %v1360_v24 }
 0xa9a   :  { %v2959_v26 = vpop.eup %2958  ;;  %2964 = vpow2.f32 %v1363_v25 }
 0xa9b   :  { %v1240_v27 = vsel %vm499_vm2, %v2959_v26, 0.0 }
 0xa9c   :  { %v2961_v28 = vpop.eup %2960  ;;  %1241 = vadd.xlane.f32.xlu0 %v1240_v27 }
 0xa9d   :  { %v1243_v29 = vsel %vm499_vm2, %v2961_v28, 0.0 }
 0xa9e   :  { %1244 = vadd.xlane.f32.xlu1 %v1243_v29 }
 0xaa2   :  { %v2963_v30 = vpop.eup %2962 }
 0xaa3   :  { %v1365_v31 = vsel %vm499_vm2, %v2963_v30, 0.0 }
 0xaa4   :  { %v2965_v32 = vpop.eup %2964  ;;  %1366 = vadd.xlane.f32.xlu0 %v1365_v31 }
 0xaa5   :  { %v1368_v1 = vsel %vm499_vm2, %v2965_v32, 0.0 }
 0xaa6   :  { %1369 = vadd.xlane.f32.xlu1 %v1368_v1 }
 0xab7   :  { %1543 = vrot.lane.b32.xlu1 %v3507_v4, %s3770_s2 }
 0xaba   :  { %1377 = vrot.lane.b32.xlu0 %v3470_v63, %s3210_s3 }
 0xabb   :  { %1541 = vrot.lane.b32.xlu1 %v3505_v3, %s3770_s2 }
 0xacc   :  { %v1172_v36 = vpop.f32.mrb[28].mxu0 }
 0xacd   :  { %v3610_v44 = vadd.f32 %v1172_v36, %v3568_v39  ;;  %v2739_v45 = vpop.f32.mrb[29].mxu0 }
 0xace   :  { %v1175_v46 = vpop.f32.mrb[30].mxu0 }
 0xacf   :  { %v3613_v34 = vadd.f32 %v1175_v46, %v3571_v47  ;;  %v2740_v48 = vpop.f32.mrb[31].mxu0 }
 0xb29   :  { %v1242_v49 = vpop.xlane.xlu0 %1241 }
 0xb2a   :  { %2966 = vrcp.f32 %v1242_v49 }
 0xb2b   :  { %v1245_v50 = vpop.xlane.xlu1 %1244 }
 0xb2c   :  { %2968 = vrcp.f32 %v1245_v50 }
 0xb31   :  { %v1367_v53 = vpop.xlane.xlu0 %1366 }
 0xb32   :  { %2970 = vrcp.f32 %v1367_v53 }
 0xb33   :  { %v1370_v54 = vpop.xlane.xlu1 %1369 }
 0xb34   :  { %v2967_v55 = vpop.eup %2966  ;;  %2972 = vrcp.f32 %v1370_v54 }
 0xb35   :  { %v1248_v56 = vmul.f32 %v2967_v55, %v2959_v26  ;;  %v1378_v57 = vpop.permute.xlu0 %1377 }
 0xb36   :  { %v2969_v33 = vpop.eup %2968 }
 0xb37   :  { %v1249_v42 = vmul.f32 %v2969_v33, %v2961_v28  ;;  %v1544_v51 = vpop.permute.xlu1 %1543 }
 0xb38   :  { %v1549_v14 = vsel %vm451_vm1, %v1544_v51, 0 }
 0xb39   :  { %v1250_v39 = vpack.c.bf16 %v1249_v42, %v1248_v56 }
 0xb3b   :  { %2750 = vmatmul.mubr.msk.bf16.vlgmr.msra.gmra.mrb[32].mxu0 %vm499_vm2, %v1250_v39  ;;  %v1542_v15 = vpop.permute.xlu1 %1541 }
 0xb3c   :  { %v2971_v58 = vpop.eup %2970  ;;  %2760 = vmatpush3.bf16.msra.mxu0 %v1378_v57  ;;  %2761 = vmatprep.mubr.msk.bf16.mxu0 %vm3209_vm0, %v3208_v35 }
 0xb3d   :  { %2773 = vmatprep.subr.bf16.mxu0 %v3208_v35  ;;  %v1373_v59 = vmul.f32 %v2971_v58, %v2963_v30 }
 0xb3e   :  { %v2973_v47 = vpop.eup %2972 }
 0xb3f   :  { %v1374_v60 = vmul.f32 %v2973_v47, %v2965_v32 }
 0xb41   :  { %v1375_v62 = vpack.c.bf16 %v1374_v60, %v1373_v59 }
 0xb43   :  { %2762 = vmatmul.mubr.msk.bf16.vlgmr.msra.gmra.mrb[36].mxu0 %vm499_vm2, %v1375_v62 }
 0xb44   :  { %2774 = vmatpush3.bf16.msra.mxu0 %v2878_v61  ;;  %2777 = vmatprep.mubr.msk.bf16.mxu0 %vm3209_vm0, %v3208_v35  ;;  %v2883_v61 = vld [vmem:[#allocation10 + $0x28] sm:$0xff]  }
 0xb45   :  { %2775 = vmatprep.subr.bf16.mxu0 %v3208_v35 }
 0xb48   :  { %2776 = vmatpush3.bf16.msra.mxu0 %v2880_v5 }
 0xb49   :  { %2787 = vmatprep.subr.bf16.mxu0 %v3208_v35 }
 0xc0e   :  { %v1288_v7 = vpop.f32.mrb[32].mxu0 }
 0xc0f   :  { %v2751_v8 = vpop.f32.mrb[33].mxu0 }
 0xc10   :  { %v1291_v41 = vpop.f32.mrb[34].mxu0 }
 0xc11   :  { %v1295_v43 = vpack.c.bf16 %v1291_v41, %v1288_v7  ;;  %v2752_v9 = vpop.f32.mrb[35].mxu0 }
 0xc13   :  { %2778 = vmatmul.mubr.msk.bf16.vlgmr.msra.gmra.mrb[40].mxu0 %vm451_vm1, %v1295_v43 }
 0xc14   :  { %2789 = vmatprep.mubr.msk.bf16.mxu0 %vm3209_vm0, %v3208_v35 }
 0xc16   :  { %v1417_v10 = vpop.f32.mrb[36].mxu0 }
 0xc17   :  { %v2763_v11 = vpop.f32.mrb[37].mxu0 }
 0xc18   :  { %v1420_v52 = vpop.f32.mrb[38].mxu0 }
 0xc19   :  { %v1424_v12 = vpack.c.bf16 %v1420_v52, %v1417_v10  ;;  %v2764_v13 = vpop.f32.mrb[39].mxu0 }
 0xc1b   :  { %2770 = vmatmul.mubr.msk.bf16.vlgmr.msra.gmra.mrb[36].mxu1 %vm451_vm1, %v1424_v12 }
 0xc1c   :  { %2782 = vmatpush3.bf16.xpose.msra.mxu1 %v1549_v14  ;;  %2783 = vmatprep.mubr.msk.bf16.mxu1 %vm3209_vm0, %v3208_v35 }
 0xc1d   :  { %2793 = vmatprep.subr.bf16.mxu1 %v3208_v35 }
 0xc23   :  { %2784 = vmatmul.mubr.msk.bf16.vlgmr.msra.gmra.mrb[40].mxu1 %vm451_vm1, %v1542_v15 }
 0xc24   :  { %2797 = vmatprep.mubr.msk.bf16.mxu1 %vm3209_vm0, %v3208_v35 }
 0xce6   :  { %v1534_v16 = vpop.f32.mrb[40].mxu0 }
 0xce7   :  { %v2779_v17 = vpop.f32.mrb[41].mxu0 }
 0xce8   :  { %v1537_v18 = vpop.f32.mrb[42].mxu0 }
 0xce9   :  { %v2780_v19 = vpop.f32.mrb[43].mxu0 }
 0xcee   :  { %v1478_v20 = vpop.f32.mrb[36].mxu1 }
 0xcef   :  { %v3637_v21 = vadd.f32 %v1534_v16, %v1478_v20  ;;  %v2771_v22 = vpop.f32.mrb[37].mxu1  ;;  %v2509_v16 = vld [vmem:[%s3749_s7] ss:$0 sm:$0xff] }
 0xcf0   :  { %v1481_v23 = vpop.f32.mrb[38].mxu1  ;;  %v1916_v20 = vadd.f32 %v2509_v16, %v3610_v44 }
 0xcf1   :  { %v3639_v24 = vadd.f32 %v1537_v18, %v1481_v23  ;;  %v2772_v25 = vpop.f32.mrb[39].mxu1  ;;  %v1917_v23 = vadd.f32 %v2509_v16, %v3613_v34 }
 0xcf2   :  { %v3006_v25 = vld [vmem:[#allocation2] sm:$0xff] }
 0xcf6   :  { %v1585_v26 = vpop.f32.mrb[40].mxu1 }
 0xcf7   :  { %v2785_v27 = vpop.f32.mrb[41].mxu1  ;;  %v1592_v28 = vsel %vm499_vm2, %v1585_v26, -inf }
 0xcf8   :  { %1593 = vmax.xlane.f32.xlu0 %v1592_v28  ;;  %v1588_v29 = vpop.f32.mrb[42].mxu1  ;;  %v3007_v27 = vld [vmem:[#allocation2 + $0x8] sm:$0xff] }
 0xcf9   :  { %v2786_v30 = vpop.f32.mrb[43].mxu1  ;;  %v1595_v31 = vsel %vm499_vm2, %v1588_v29, -inf  ;;  %v1921_v28 = vadd.f32 %v3007_v27, %v1917_v23  ;;  %v2909_v23 = vld [vmem:[#allocation11 + $0x74] ss:$8 sps:$4 sm:$0xff]  }
 0xcfa   :  { %1596 = vmax.xlane.f32.xlu1 %v1595_v31 }
 0xd0b   :  { %1615 = vrot.lane.b32.xlu1 %v3470_v63, %s3770_s2 }
 0xd0f   :  { %1725 = vrot.lane.b32.xlu1 %v3505_v3, %s3211_s5  ;;  %v2882_v3 = vld [vmem:[#allocation10 + $0x20] sm:$0xff]  }
 0xd10   :  { %2794 = vmatpush3.bf16.msra.mxu1 %v2882_v3 }
 0xd11   :  { %2795 = vmatprep.subr.bf16.mxu1 %v3208_v35 }
 0xd14   :  { %2796 = vmatpush3.bf16.msra.mxu1 %v2883_v61  ;;  %v3008_v61 = vld [vmem:[#allocation2 + $0x10] sm:$0xff] }
 0xd15   :  { %2807 = vmatprep.subr.bf16.mxu1 %v3208_v35 }
 0xd85   :  { %v1594_v32 = vpop.xlane.xlu0 %1593 }
 0xd86   :  { %v1598_v1 = vsub.f32 %v1585_v26, %v1594_v32  ;;  %v1920_v26 = vadd.f32 %v3006_v25, %v1916_v20  ;;  %v2906_v20 = vld [vmem:[#allocation11 + $0x64] ss:$8 sps:$4 sm:$0xff]   ;;  %v2907_v25 = vld [vmem:[#allocation11 + $0x70] ss:$8 sps:$4 sm:$0xff]  }
 0xd87   :  { %v1597_v36 = vpop.xlane.xlu1 %1596 }
 0xd88   :  { %v1600_v45 = vmul.f32 1.442695, %v1598_v1  ;;  %v1599_v46 = vsub.f32 %v1588_v29, %v1597_v36  ;;  %v2884_v29 = vld [vmem:[#allocation10 + $0x30] sm:$0xff]  }
 0xd8a   :  { %2974 = vpow2.f32 %v1600_v45  ;;  %v1602_v48 = vmul.f32 1.442695, %v1599_v46 }
 0xd8b   :  { %v1616_v49 = vpop.permute.xlu1 %1615 }
 0xd8c   :  { %2976 = vpow2.f32 %v1602_v48  ;;  %2788 = vmatpush3.bf16.msra.mxu0 %v1616_v49 }
 0xd8d   :  { %2801 = vmatprep.subr.bf16.mxu0 %v3208_v35 }
 0xd94   :  { %v2975_v50 = vpop.eup %2974 }
 0xd95   :  { %v1604_v53 = vsel %vm499_vm2, %v2975_v50, 0.0 }
 0xd96   :  { %v2977_v54 = vpop.eup %2976  ;;  %1605 = vadd.xlane.f32.xlu0 %v1604_v53 }
 0xd97   :  { %v1607_v55 = vsel %vm499_vm2, %v2977_v54, 0.0 }
 0xd9a   :  { %1608 = vadd.xlane.f32.xlu0 %v1607_v55 }
 0xdb0   :  { %1727 = vrot.lane.b32.xlu0 %v3507_v4, %s3211_s5  ;;  %v1726_v4 = vpop.permute.xlu1 %1725 }
 0xe23   :  { %v1606_v33 = vpop.xlane.xlu0 %1605 }
 0xe24   :  { %2978 = vrcp.f32 %v1606_v33 }
 0xe27   :  { %v1609_v56 = vpop.xlane.xlu0 %1608 }
 0xe28   :  { %2980 = vrcp.f32 %v1609_v56 }
 0xe2b   :  { %v1728_v47 = vpop.permute.xlu0 %1727 }
 0xe2c   :  { %v1733_v60 = vsel %vm451_vm1, %v1728_v47, 0 }
 0xe2e   :  { %v2979_v42 = vpop.eup %2978 }
 0xe2f   :  { %v1612_v57 = vmul.f32 %v2979_v42, %v2975_v50 }
 0xe32   :  { %v2981_v39 = vpop.eup %2980 }
 0xe33   :  { %v1613_v58 = vmul.f32 %v2981_v39, %v2977_v54 }
 0xe35   :  { %v1614_v59 = vpack.c.bf16 %v1613_v58, %v1612_v57 }
 0xe37   :  { %2790 = vmatmul.mubr.msk.bf16.vlgmr.msra.gmra.mrb[44].mxu0 %vm499_vm2, %v1614_v59 }
 0xe38   :  { %2802 = vmatpush3.bf16.xpose.msra.mxu0 %v1733_v60  ;;  %2803 = vmatprep.mubr.msk.bf16.mxu0 %vm3209_vm0, %v3208_v35 }
 0xe39   :  { %2813 = vmatprep.subr.bf16.mxu0 %v3208_v35 }
 0xe3f   :  { %2804 = vmatmul.mubr.msk.bf16.vlgmr.msra.gmra.mrb[48].mxu0 %vm451_vm1, %v1726_v4 }
 0xe40   :  { %2817 = vmatprep.mubr.msk.bf16.mxu0 %vm3209_vm0, %v3208_v35  ;;  %2814 = vmatpush3.bf16.msra.mxu0 %v2884_v29 }
 0xe41   :  { %2815 = vmatprep.subr.bf16.mxu0 %v3208_v35 }
 0xf0a   :  { %v1655_v62 = vpop.f32.mrb[44].mxu0 }
 0xf0b   :  { %v2791_v2 = vpop.f32.mrb[45].mxu0 }
 0xf0c   :  { %v1658_v5 = vpop.f32.mrb[46].mxu0 }
 0xf0d   :  { %v1662_v6 = vpack.c.bf16 %v1658_v5, %v1655_v62  ;;  %v2792_v7 = vpop.f32.mrb[47].mxu0 }
 0xf0e   :  { %v3009_v7 = vld [vmem:[#allocation2 + $0x18] sm:$0xff] }
 0xf0f   :  { %2798 = vmatmul.mubr.msk.bf16.vlgmr.msra.gmra.mrb[44].mxu1 %vm451_vm1, %v1662_v6 }
 0xf10   :  { %2809 = vmatprep.mubr.msk.bf16.mxu1 %vm3209_vm0, %v3208_v35  ;;  %v2885_v35 = vld [vmem:[#allocation10 + $0x38] sm:$0xff]  }
 0xf11   :  { %2816 = vmatpush3.bf16.msra.mxu0 %v2885_v35 }
 0xf12   :  { %v1769_v8 = vpop.f32.mrb[48].mxu0 }
 0xf13   :  { %v2805_v41 = vpop.f32.mrb[49].mxu0  ;;  %v1776_v43 = vsel %vm499_vm2, %v1769_v8, -inf }
 0xf14   :  { %1777 = vmax.xlane.f32.xlu1 %v1776_v43  ;;  %v1772_v9 = vpop.f32.mrb[50].mxu0 }
 0xf15   :  { %v2806_v10 = vpop.f32.mrb[51].mxu0  ;;  %v1779_v11 = vsel %vm499_vm2, %v1772_v9, -inf }
 0xf16   :  { %1780 = vmax.xlane.f32.xlu0 %v1779_v11  ;;  %v2886_v10 = vld [vmem:[#allocation11] ss:$8 sps:$4 sm:$0xff]   ;;  %v2888_v11 = vld [vmem:[#allocation11 + $0x4] ss:$8 sps:$4 sm:$0xff]  }
 0xfa1   :  { %v1778_v51 = vpop.xlane.xlu1 %1777 }
 0xfa2   :  { %v1782_v52 = vsub.f32 %v1769_v8, %v1778_v51  ;;  %v2889_v51 = vld [vmem:[#allocation11 + $0x10] ss:$8 sps:$4 sm:$0xff]  }
 0xfa3   :  { %v1781_v12 = vpop.xlane.xlu0 %1780 }
 0xfa4   :  { %v1784_v13 = vmul.f32 1.442695, %v1782_v52  ;;  %v1783_v14 = vsub.f32 %v1772_v9, %v1781_v12  ;;  %v2891_v52 = vld [vmem:[#allocation11 + $0x14] ss:$8 sps:$4 sm:$0xff]   ;;  %v2894_v12 = vld [vmem:[#allocation11 + $0x24] ss:$8 sps:$4 sm:$0xff]  }
 0xfa6   :  { %2982 = vpow2.f32 %v1784_v13  ;;  %v1786_v15 = vmul.f32 1.442695, %v1783_v14  ;;  %v2892_v13 = vld [vmem:[#allocation11 + $0x20] ss:$8 sps:$4 sm:$0xff]   ;;  %v2897_v14 = vld [vmem:[#allocation11 + $0x34] ss:$8 sps:$4 sm:$0xff]  }
 0xfa8   :  { %2984 = vpow2.f32 %v1786_v15  ;;  %v2895_v15 = vld [vmem:[#allocation11 + $0x30] ss:$8 sps:$4 sm:$0xff]  }
 0xfb0   :  { %v2983_v17 = vpop.eup %2982 }
 0xfb1   :  { %v1788_v18 = vsel %vm499_vm2, %v2983_v17, 0.0 }
 0xfb2   :  { %v2985_v19 = vpop.eup %2984  ;;  %1789 = vadd.xlane.f32.xlu0 %v1788_v18  ;;  %v2903_v18 = vld [vmem:[#allocation11 + $0x54] ss:$8 sps:$4 sm:$0xff]  }
 0xfb3   :  { %v1791_v22 = vsel %vm499_vm2, %v2985_v19, 0.0 }
 0xfb4   :  { %1792 = vadd.xlane.f32.xlu1 %v1791_v22  ;;  %v2904_v22 = vld [vmem:[#allocation11 + $0x60] ss:$8 sps:$4 sm:$0xff]  }
 0xfb8   :  { %1926 = vadd.xlane.f32.xlu1 %v1920_v26 }
 0xfbc   :  { %1928 = vadd.xlane.f32.xlu1 %v1921_v28 }
 0xfc8   :  { %1799 = vrot.lane.b32.xlu0 %v3470_v63, %s3211_s5 }
 0xfe2   :  { %v1716_v44 = vpop.f32.mrb[44].mxu1 }
 0xfe3   :  { %v1723_v30 = vadd.f32 %v1716_v44, %v3637_v21  ;;  %v2799_v31 = vpop.f32.mrb[45].mxu1 }
 0xfe4   :  { %v1719_v32 = vpop.f32.mrb[46].mxu1 }
 0xfe5   :  { %v1724_v34 = vadd.f32 %v1719_v32, %v3639_v24  ;;  %v2800_v1 = vpop.f32.mrb[47].mxu1 }
0x103f   :  { %v1790_v36 = vpop.xlane.xlu0 %1789 }
0x1040   :  { %2986 = vrcp.f32 %v1790_v36 }
0x1041   :  { %v1793_v45 = vpop.xlane.xlu1 %1792 }
0x1042   :  { %2988 = vrcp.f32 %v1793_v45 }
0x1043   :  { %v1800_v46 = vpop.permute.xlu0 %1799 }
0x1044   :  { %2808 = vmatpush3.bf16.msra.mxu1 %v1800_v46 }
0x1045   :  { %v1927_v33 = vpop.xlane.xlu1 %1926  ;;  %2101 = vmatprep.subr.bf16.mxu1 %v2888_v11 }
0x1046   :  { %v1935_v60 = vmul.f32 0.0078125, %v1927_v33 }
0x1048   :  { %v1939_v5 = vsub.f32 %v1920_v26, %v1935_v60  ;;  %v2917_v60 = vld [vmem:[#allocation13 + $0x18] sm:$0xff]  }
0x1049   :  { %v1929_v2 = vpop.xlane.xlu1 %1928 }
0x104a   :  { %v2987_v48 = vpop.eup %2986  ;;  %v1936_v6 = vmul.f32 0.0078125, %v1929_v2  ;;  %v1943_v43 = vmul.f32 %v1939_v5, %v1939_v5  ;;  %v2922_v2 = vld [vmem:[#allocation13 + $0x70] sm:$0xff]  }
0x104b   :  { %v1796_v49 = vmul.f32 %v2987_v48, %v2983_v17  ;;  %v2898_v17 = vld [vmem:[#allocation11 + $0x40] ss:$8 sps:$4 sm:$0xff]  }
0x104c   :  { %v2989_v63 = vpop.eup %2988  ;;  %v1940_v41 = vsub.f32 %v1921_v28, %v1936_v6  ;;  %v2924_v6 = vld [vmem:[#allocation13 + $0x78] sm:$0xff]  }
0x104d   :  { %v1797_v50 = vmul.f32 %v2989_v63, %v2985_v19  ;;  %v2901_v19 = vld [vmem:[#allocation11 + $0x50] ss:$8 sps:$4 sm:$0xff]  }
0x104e   :  { %v1944_v9 = vmul.f32 %v1940_v41, %v1940_v41 }
0x104f   :  { %v1798_v53 = vpack.c.bf16 %v1797_v50, %v1796_v49  ;;  %v2510_v50 = vld [vmem:[%s3754_s12] ss:$0 sm:$0xff] }
0x1051   :  { %2810 = vmatmul.mubr.msk.bf16.vlgmr.msra.gmra.mrb[48].mxu1 %vm499_vm2, %v1798_v53 }
0x1052   :  { %2133 = vmatprep.mubr.bf16.mxu1 %v3207_v0  ;;  %2102 = vmatpush1.bf16.msra.mxu1 %v2886_v10 }
0x1053   :  { %2103 = vmatprep.subr.bf16.mxu1 %v2891_v52 }
0x1056   :  { %2104 = vmatpush1.bf16.msra.mxu1 %v2889_v51 }
0x1057   :  { %2105 = vmatprep.subr.bf16.mxu1 %v2894_v12 }
0x105a   :  { %2106 = vmatpush1.bf16.msra.mxu1 %v2892_v13 }
0x105b   :  { %2107 = vmatprep.subr.bf16.mxu1 %v2897_v14 }
0x105e   :  { %2108 = vmatpush1.bf16.msra.mxu1 %v2895_v15 }
0x1124   :  { %v1839_v21 = vpop.f32.mrb[48].mxu1 }
0x1125   :  { %v2811_v24 = vpop.f32.mrb[49].mxu1 }
0x1126   :  { %v1842_v54 = vpop.f32.mrb[50].mxu1  ;;  %v2511_v24 = vld [vmem:[%s3755_s13] ss:$0 sm:$0xff] }
0x1127   :  { %v1846_v55 = vpack.c.bf16 %v1842_v54, %v1839_v21  ;;  %v2812_v3 = vpop.f32.mrb[51].mxu1 }
0x1129   :  { %2818 = vmatmul.mubr.msk.bf16.vlgmr.msra.gmra.mrb[52].mxu0 %vm451_vm1, %v1846_v55 }
0x11fc   :  { %v1900_v56 = vpop.f32.mrb[52].mxu0 }
0x11fd   :  { %v1907_v42 = vadd.f32 %v1900_v56, %v1723_v30  ;;  %v2819_v39 = vpop.f32.mrb[53].mxu0  ;;  %v2910_v56 = vld [vmem:[#allocation13 + $0x40] sm:$0xff]  }
0x11fe   :  { %v1903_v57 = vpop.f32.mrb[54].mxu0  ;;  %v2912_v39 = vld [vmem:[#allocation13 + $0x48] sm:$0xff]   ;;  %2613 = vmatprep.subr.bf16.mxu0 %v2910_v56 }
0x11ff   :  { %v1918_v58 = vadd.f32 %v2509_v16, %v1907_v42  ;;  %v1908_v47 = vadd.f32 %v1903_v57, %v1724_v34  ;;  %v2820_v59 = vpop.f32.mrb[55].mxu0  ;;  %v2911_v42 = vld [vmem:[#allocation13] sm:$0xff]   ;;  %v2913_v57 = vld [vmem:[#allocation13 + $0x8] sm:$0xff]  }
0x1200   :  { %2614 = vmatpush3.bf16.msra.mxu0 %v2911_v42  ;;  %v2916_v59 = vld [vmem:[#allocation13 + $0x58] sm:$0xff]   ;;  %v2528_v42 = vld [vmem:[%s3753_s11] ss:$0 sm:$0xff] }
0x1201   :  { %v1919_v4 = vadd.f32 %v2509_v16, %v1908_v47  ;;  %v1922_v62 = vadd.f32 %v3008_v61, %v1918_v58  ;;  %v2900_v16 = vld [vmem:[#allocation11 + $0x44] ss:$8 sps:$4 sm:$0xff]   ;;  %2615 = vmatprep.subr.bf16.mxu0 %v2912_v39  ;;  %v2914_v58 = vld [vmem:[#allocation13 + $0x50] sm:$0xff]  }
0x1202   :  { %2109 = vmatprep.subr.bf16.mxu1 %v2900_v16  ;;  %v2915_v47 = vld [vmem:[#allocation13 + $0x10] sm:$0xff]   ;;  %v2919_v61 = vld [vmem:[#allocation13 + $0x20] sm:$0xff]  }
0x1203   :  { %1930 = vadd.xlane.f32.xlu1 %v1922_v62  ;;  %v1923_v8 = vadd.f32 %v3009_v7, %v1919_v4  ;;  %2110 = vmatpush1.bf16.msra.mxu1 %v2898_v17  ;;  %v2918_v4 = vld [vmem:[#allocation13 + $0x60] sm:$0xff]   ;;  %v2925_v7 = vld [vmem:[#allocation13 + $0x38] sm:$0xff]  }
0x1204   :  { %2111 = vmatprep.subr.bf16.mxu1 %v2903_v18  ;;  %2616 = vmatpush3.bf16.msra.mxu0 %v2913_v57 }
0x1205   :  { %2617 = vmatprep.subr.bf16.mxu0 %v2914_v58 }
0x1207   :  { %1932 = vadd.xlane.f32.xlu1 %v1923_v8  ;;  %2112 = vmatpush1.bf16.msra.mxu1 %v2901_v19  ;;  %v2009_v19 = vld [vmem:[%s3751_s9] sm:$0x3] }
0x1208   :  { %2113 = vmatprep.subr.bf16.mxu1 %v2906_v20  ;;  %2618 = vmatpush3.bf16.msra.mxu0 %v2915_v47  ;;  %v2014_v20 = vrot.slane %v2009_v19, %v184_v38 }
0x1209   :  { %2619 = vmatprep.subr.bf16.mxu0 %v2916_v59 }
0x120b   :  { %1947 = vadd.xlane.f32.xlu1 %v1943_v43  ;;  %2114 = vmatpush1.bf16.msra.mxu1 %v2904_v22  ;;  %v2018_v22 = vrot.slane %v2009_v19, %v188_v40 }
0x120c   :  { %2115 = vmatprep.subr.bf16.mxu1 %v2909_v23  ;;  %2620 = vmatpush3.bf16.msra.mxu0 %v2917_v60 }
0x120d   :  { %2621 = vmatprep.subr.bf16.mxu0 %v2918_v4 }
0x120f   :  { %1949 = vadd.xlane.f32.xlu1 %v1944_v9  ;;  %2116 = vmatpush1.bf16.msra.mxu1 %v2907_v25 }
0x1210   :  { %2622 = vmatpush3.bf16.msra.mxu0 %v2919_v61 }
0x1290   :  { %v1931_v26 = vpop.xlane.xlu1 %1930 }
0x1291   :  { %v1937_v27 = vmul.f32 0.0078125, %v1931_v26 }
0x1293   :  { %v3682_v28 = vsub.f32 %v1922_v62, %v1937_v27  ;;  %v2921_v62 = vld [vmem:[#allocation13 + $0x28] sm:$0xff]  }
0x1294   :  { %v1933_v29 = vpop.xlane.xlu1 %1932 }
0x1295   :  { %v1938_v44 = vmul.f32 0.0078125, %v1933_v29  ;;  %v1945_v30 = vmul.f32 %v3682_v28, %v3682_v28 }
0x1297   :  { %v3686_v31 = vsub.f32 %v1923_v8, %v1938_v44  ;;  %1951 = vadd.xlane.f32.xlu0 %v1945_v30 }
0x1298   :  { %v1948_v32 = vpop.xlane.xlu1 %1947 }
0x1299   :  { %v1955_v34 = vmul.f32 0.0078125, %v1948_v32  ;;  %v1946_v1 = vmul.f32 %v3686_v31, %v3686_v31 }
0x129b   :  { %v1959_v36 = vadd.f32 1e-05, %v1955_v34  ;;  %1953 = vadd.xlane.f32.xlu1 %v1946_v1 }
0x129c   :  { %v1950_v45 = vpop.xlane.xlu1 %1949 }
0x129d   :  { %2990 = vrsqrt.f32 %v1959_v36  ;;  %v1956_v46 = vmul.f32 0.0078125, %v1950_v45 }
0x129f   :  { %v1960_v48 = vadd.f32 1e-05, %v1956_v46 }
0x12a1   :  { %2992 = vrsqrt.f32 %v1960_v48 }
0x12a7   :  { %v2991_v63 = vpop.eup %2990 }
0x12a8   :  { %v1967_v49 = vmul.f32 %v2991_v63, %v1939_v5  ;;  %v2923_v5 = vld [vmem:[#allocation13 + $0x30] sm:$0xff]  }
0x12aa   :  { %v1977_v21 = vmul.f32 %v2510_v50, %v1967_v49 }
0x12ab   :  { %v2993_v53 = vpop.eup %2992 }
0x12ac   :  { %v1968_v35 = vmul.f32 %v2993_v53, %v1940_v41  ;;  %v3696_v55 = vadd.f32 %v2511_v24, %v1977_v21 }
0x12ae   :  { %v1978_v54 = vmul.f32 %v2510_v50, %v1968_v35 }
0x12b0   :  { %v3698_v3 = vadd.f32 %v2511_v24, %v1978_v54 }
0x12b2   :  { %v1991_v33 = vpack.c.bf16 %v3698_v3, %v3696_v55 }
0x12b4   :  { %2134 = vmatmul.mubr.bf16.vlgmr.msra.gmra.mrb[52].mxu1 %v1991_v33 }
0x12b5   :  { %2143 = vmatprep.mubr.bf16.mxu1 %v3207_v0  ;;  %v2920_v0 = vld [vmem:[#allocation13 + $0x68] sm:$0xff]  }
0x12b6   :  { %2623 = vmatprep.subr.bf16.mxu0 %v2920_v0 }
0x12b7   :  { %2624 = vmatpush3.bf16.msra.mxu0 %v2921_v62 }
0x12b8   :  { %2625 = vmatprep.subr.bf16.mxu0 %v2922_v2 }
0x12bb   :  { %2626 = vmatpush3.bf16.msra.mxu0 %v2923_v5 }
0x12bc   :  { %2627 = vmatprep.subr.bf16.mxu0 %v2924_v6 }
0x12bf   :  { %2628 = vmatpush3.bf16.msra.mxu0 %v2925_v7 }
0x1324   :  { %v1952_v8 = vpop.xlane.xlu0 %1951 }
0x1325   :  { %v1957_v41 = vmul.f32 0.0078125, %v1952_v8 }
0x1327   :  { %v1961_v43 = vadd.f32 1e-05, %v1957_v41 }
0x1328   :  { %v1954_v9 = vpop.xlane.xlu1 %1953 }
0x1329   :  { %2994 = vrsqrt.f32 %v1961_v43  ;;  %v1958_v10 = vmul.f32 0.0078125, %v1954_v9 }
0x132b   :  { %v1962_v11 = vadd.f32 1e-05, %v1958_v10 }
0x132d   :  { %2996 = vrsqrt.f32 %v1962_v11 }
0x1333   :  { %v2995_v51 = vpop.eup %2994 }
0x1334   :  { %v1969_v52 = vmul.f32 %v2995_v51, %v3682_v28 }
0x1336   :  { %v1979_v14 = vmul.f32 %v2510_v50, %v1969_v52 }
0x1337   :  { %v2997_v12 = vpop.eup %2996 }
0x1338   :  { %v1970_v13 = vmul.f32 %v2997_v12, %v3686_v31  ;;  %v1989_v16 = vadd.f32 %v2511_v24, %v1979_v14 }
0x133a   :  { %v1980_v15 = vmul.f32 %v2510_v50, %v1970_v13 }
0x133c   :  { %v3705_v17 = vadd.f32 %v2511_v24, %v1980_v15 }
0x133e   :  { %v1992_v18 = vpack.c.bf16 %v3705_v17, %v1989_v16 }
0x1340   :  { %2144 = vmatmul.mubr.bf16.gmra.mrb[56].mxu1 %v1992_v18 }
0x1387   :  { %v2135_v23 = vpop.f32.mrb[52].mxu1 }
0x1388   :  { %v2136_v25 = vadd.f32 %v2135_v23, %v2014_v20  ;;  %v2137_v26 = vpop.f32.mrb[53].mxu1 }
0x1389   :  { %v2138_v27 = vadd.f32 %v2137_v26, %v2018_v22  ;;  %v2139_v28 = vpop.f32.mrb[54].mxu1 }
0x138a   :  { %v2140_v29 = vadd.f32 %v2139_v28, %v2014_v20  ;;  %v2141_v44 = vpop.f32.mrb[55].mxu1  ;;  %v2154_v31 = vmax.f32 %v2136_v25, 0.0 }
0x138b   :  { %v2142_v30 = vadd.f32 %v2141_v44, %v2018_v22  ;;  %v2155_v34 = vmax.f32 %v2138_v27, 0.0 }
0x138c   :  { %v2156_v32 = vmax.f32 %v2140_v29, 0.0 }
0x138d   :  { %v2157_v1 = vmax.f32 %v2142_v30, 0.0 }
0x138e   :  { %v2162_v36 = vpack.c.bf16 %v2156_v32, %v2154_v31  ;;  %v2545_v31 = vld [vmem:[%s3756_s14] ss:$0 sm:$0xff]  ;;  %s3212_s14 = smov [#allocation14]  }
0x138f   :  { %v2163_v45 = vpack.c.bf16 %v2157_v1, %v2155_v34  ;;  %v2546_v34 = vld [vmem:[%s3757_s15] ss:$0 sm:$0xff]  ;;  %s2429_s15 = sshll.u32 %s3212_s14, 4  ;;  %s2430_s15 = int_to_ptr.vmem [resolvable:$true] %s2429_s15 }
0x1390   :  { %s3164_s1 = scalar_lea.vmem %s2430_s15, 512  ;;  %p3169_p1 = scmp.lt.s32.totalorder %s2430_s15, %s2430_s15 }
0x1391   :  { %2333 = vmatprep.mubr.bf16.mxu0 %v2163_v45  ;;  %p3165_p0 = scmp.ne.s32.totalorder %s2430_s15, %s3164_s1  ;;  %p3170_p2 = scmp.lt.s32.totalorder %s3164_s1, %s3164_s1 }
0x1392   :  { %2334 = vmatmul.mubr.bf16.vlgmr.msra.gmra.mrb[56].mxu0 %v2162_v36 }
0x1393   :  { %p3171_p3 = por %p3170_p2, %p3169_p1 }
0x1395   :  { %p3172_p4 = pnand %p3171_p3, %p3165_p0 }
0x1413   :  { %v2145_v38 = vpop.f32.mrb[56].mxu1 }
0x1414   :  { %v2146_v46 = vadd.f32 %v2145_v38, %v2014_v20  ;;  %v2147_v37 = vpop.f32.mrb[57].mxu1 }
0x1415   :  { %v2148_v40 = vadd.f32 %v2147_v37, %v2018_v22  ;;  %v2149_v48 = vpop.f32.mrb[58].mxu1 }
0x1416   :  { %v2150_v63 = vadd.f32 %v2149_v48, %v2014_v20  ;;  %v2151_v49 = vpop.f32.mrb[59].mxu1  ;;  %v2158_v53 = vmax.f32 %v2146_v46, 0.0 }
0x1417   :  { %v2152_v50 = vadd.f32 %v2151_v49, %v2018_v22  ;;  %v2159_v21 = vmax.f32 %v2148_v40, 0.0 }
0x1418   :  { %v2160_v35 = vmax.f32 %v2150_v63, 0.0 }
0x1419   :  { %v2161_v24 = vmax.f32 %v2152_v50, 0.0 }
0x141a   :  { %v2164_v54 = vpack.c.bf16 %v2160_v35, %v2158_v53 }
0x141b   :  { %v2165_v33 = vpack.c.bf16 %v2161_v24, %v2159_v21 }
0x141d   :  { %2341 = vmatprep.mubr.bf16.mxu0 %v2165_v33 }
0x141e   :  { %2342 = vmatmul.mubr.bf16.gmra.mrb[60].mxu0 %v2164_v54 }
0x1465   :  { %v2629_v56 = vpop.f32.mrb[56].mxu0 }
0x1466   :  { %v2630_v39 = vpop.f32.mrb[57].mxu0 }
0x1467   :  { %v2631_v57 = vadd.f32 %v2630_v39, %v2629_v56  ;;  %v2632_v58 = vpop.f32.mrb[58].mxu0 }
0x1468   :  { %v2633_v47 = vpop.f32.mrb[59].mxu0 }
0x1469   :  { %v2336_v59 = vadd.f32 %v2631_v57, %v2528_v42  ;;  %v2634_v60 = vadd.f32 %v2633_v47, %v2632_v58 }
0x146b   :  { %v2339_v4 = vadd.f32 %v2634_v60, %v2528_v42  ;;  %v2350_v61 = vadd.f32 %v2336_v59, %v3696_v55 }
0x146d   :  { %2356 = vadd.xlane.f32.xlu1 %v2350_v61  ;;  %v2351_v0 = vadd.f32 %v2339_v4, %v3698_v3 }
0x1471   :  { %2358 = vadd.xlane.f32.xlu1 %v2351_v0 }
0x14f1   :  { %v2635_v62 = vpop.f32.mrb[60].mxu0 }
0x14f2   :  { %v2636_v2 = vpop.f32.mrb[61].mxu0 }
0x14f3   :  { %v2637_v5 = vadd.f32 %v2636_v2, %v2635_v62  ;;  %v2638_v6 = vpop.f32.mrb[62].mxu0 }
0x14f4   :  { %v2639_v7 = vpop.f32.mrb[63].mxu0 }
0x14f5   :  { %v2344_v8 = vadd.f32 %v2637_v5, %v2528_v42  ;;  %v2640_v41 = vadd.f32 %v2639_v7, %v2638_v6 }
0x14f7   :  { %v2347_v43 = vadd.f32 %v2640_v41, %v2528_v42  ;;  %v2352_v9 = vadd.f32 %v2344_v8, %v1989_v16 }
0x14f9   :  { %2360 = vadd.xlane.f32.xlu1 %v2352_v9  ;;  %v2353_v51 = vadd.f32 %v2347_v43, %v3705_v17 }
0x14fa   :  { %v2357_v10 = vpop.xlane.xlu1 %2356 }
0x14fb   :  { %v2364_v11 = vmul.f32 0.0078125, %v2357_v10 }
0x14fd   :  { %v2368_v52 = vsub.f32 %v2350_v61, %v2364_v11  ;;  %2362 = vadd.xlane.f32.xlu1 %v2353_v51 }
0x14fe   :  { %v2359_v55 = vpop.xlane.xlu1 %2358 }
0x14ff   :  { %v2365_v12 = vmul.f32 0.0078125, %v2359_v55  ;;  %v2372_v3 = vmul.f32 %v2368_v52, %v2368_v52 }
0x1501   :  { %v2369_v13 = vsub.f32 %v2351_v0, %v2365_v12  ;;  %2376 = vadd.xlane.f32.xlu1 %v2372_v3 }
0x1503   :  { %v2373_v14 = vmul.f32 %v2369_v13, %v2369_v13 }
0x1505   :  { %2378 = vadd.xlane.f32.xlu1 %v2373_v14 }
0x1586   :  { %v2361_v15 = vpop.xlane.xlu1 %2360 }
0x1587   :  { %v2366_v18 = vmul.f32 0.0078125, %v2361_v15 }
0x1589   :  { %v2370_v19 = vsub.f32 %v2352_v9, %v2366_v18 }
0x158a   :  { %v2363_v20 = vpop.xlane.xlu1 %2362 }
0x158b   :  { %v2367_v22 = vmul.f32 0.0078125, %v2363_v20  ;;  %v2374_v16 = vmul.f32 %v2370_v19, %v2370_v19 }
0x158d   :  { %v2371_v23 = vsub.f32 %v2353_v51, %v2367_v22  ;;  %2380 = vadd.xlane.f32.xlu0 %v2374_v16 }
0x158e   :  { %v2377_v25 = vpop.xlane.xlu1 %2376 }
0x158f   :  { %v2384_v26 = vmul.f32 0.0078125, %v2377_v25  ;;  %v2375_v17 = vmul.f32 %v2371_v23, %v2371_v23 }
0x1591   :  { %v2388_v27 = vadd.f32 1e-05, %v2384_v26  ;;  %2382 = vadd.xlane.f32.xlu1 %v2375_v17 }
0x1592   :  { %v2379_v28 = vpop.xlane.xlu1 %2378 }
0x1593   :  { %2998 = vrsqrt.f32 %v2388_v27  ;;  %v2385_v29 = vmul.f32 0.0078125, %v2379_v28 }
0x1595   :  { %v2389_v44 = vadd.f32 1e-05, %v2385_v29 }
0x1597   :  { %3000 = vrsqrt.f32 %v2389_v44 }
0x159d   :  { %v2999_v30 = vpop.eup %2998 }
0x159e   :  { %v2396_v32 = vmul.f32 %v2999_v30, %v2368_v52 }
0x15a0   :  { %v2406_v1 = vmul.f32 %v2545_v31, %v2396_v32 }
0x15a1   :  { %v3001_v36 = vpop.eup %3000 }
0x15a2   :  { %v2397_v45 = vmul.f32 %v3001_v36, %v2369_v13  ;;  %v2416_v38 = vadd.f32 %v2546_v34, %v2406_v1 }
0x15a4   :  { %v2407_v46 = vmul.f32 %v2545_v31, %v2397_v45  ;;  %2420 = vst [vmem:[#allocation14] sm:$0xff] %v2416_v38 }
0x15a6   :  { %v2417_v37 = vadd.f32 %v2546_v34, %v2407_v46 }
0x15a8   :  { %2421 = vst [vmem:[#allocation14 + $0x8] sm:$0xff] %v2417_v37 }
0x161a   :  { %v2381_v40 = vpop.xlane.xlu0 %2380 }
0x161b   :  { %v2386_v48 = vmul.f32 0.0078125, %v2381_v40 }
0x161d   :  { %v2390_v63 = vadd.f32 1e-05, %v2386_v48 }
0x161e   :  { %v2383_v49 = vpop.xlane.xlu1 %2382 }
0x161f   :  { %3002 = vrsqrt.f32 %v2390_v63  ;;  %v2387_v50 = vmul.f32 0.0078125, %v2383_v49 }
0x1621   :  { %v2391_v53 = vadd.f32 1e-05, %v2387_v50 }
0x1623   :  { %3004 = vrsqrt.f32 %v2391_v53 }
0x1629   :  { %v3003_v35 = vpop.eup %3002 }
0x162a   :  { %v2398_v21 = vmul.f32 %v3003_v35, %v2370_v19 }
0x162c   :  { %v2408_v24 = vmul.f32 %v2545_v31, %v2398_v21 }
0x162d   :  { %v3005_v54 = vpop.eup %3004 }
0x162e   :  { %v2399_v33 = vmul.f32 %v3005_v54, %v2371_v23  ;;  %v2418_v56 = vadd.f32 %v2546_v34, %v2408_v24 }
0x1630   :  { %v2409_v42 = vmul.f32 %v2545_v31, %v2399_v33  ;;  %2422 = vst [vmem:[#allocation14 + $0x10] sm:$0xff] %v2418_v56 }
0x1632   :  { %v2419_v39 = vadd.f32 %v2546_v34, %v2409_v42 }
0x1634   :  { %2423 = vst [vmem:[#allocation14 + $0x18] sm:$0xff] %v2419_v39 }
0x1635   :  { %3175 = shalt.err (!%p3172_p4)
}
0x1636   :  { %s3176_s28 = scalar_lea.hbm %s3758_s16, 512 }
0x1637   :  { %p3177_p5 = scmp.ne.s32.totalorder %s3758_s16, %s3176_s28  ;;  %p3180_p6 = scmp.lt.u32.totalorder %s3176_s28, %s3758_s16 }
0x1639   :  { %p3182_p7 = pnand %p3180_p6, %p3177_p5 }
0x163b   :  { %3185 = shalt.err (!%p3182_p7)
}
0x163c   :  { %2435 = dma.vmem_to_hbm [thread:$0]  %s2430_s15, 512, %s3758_s16, [#allocation4], %s3768_s17, %s3768_s17, %s3767_s24  }
0x163d   :  { %3194 = dma.done.wait [#allocation4], 512  }
0x163e   :  { %3195 = vsyncadd [#allocation4], 4294966784 }
0x163f   :  { %2439 = vsyncpa [#allocation3], 1 }
0x1640   :  { %2440 = vsyncpa [#allocation6], 1 }
0x1641   :  { %2441 = vsyncpa [#allocation9], 1 }
0x1642   :  { %2442 = vsyncpa [#allocation12], 1 }
0x1643   :  { %2443 = vsyncpa [#allocation4], 1 }

</bundles_post_ra>
